<compile_context>
chip_gen: v5e
topology: v5e:2x2
jax: 0.10.0
libtpu: 0.0.40
codegen_flags: <defaults>
</compile_context>

<pallas_src>
import jax
import jax.numpy as jnp
from jax import lax
from jax.experimental import pallas as pl
from jax.experimental.pallas import tpu as pltpu


def _round_up(a, b):
    return ((a + b - 1) // b) * b


def prepare_cbow_params(emb_table, lin_weight, lin_bias):
    """One-time parameter prep (outside the per-step forward).

    emb_table:  (V, D) f32  nn.Embedding weight
    lin_weight: (V, D) f32  nn.Linear weight
    lin_bias:   (V,)   f32  nn.Linear bias

    Returns (emb_pad f32 (V, D_pad), w_t_bf16 (D_pad, V), bias f32 (V,)).
    """
    V, D = emb_table.shape
    D_pad = max(_round_up(D, 128), 128)
    pad = D_pad - D
    emb_pad = jnp.pad(emb_table.astype(jnp.float32), ((0, 0), (0, pad)))
    # Transpose to (D, V), zero-pad the contraction dim, cast once to bf16.
    w_t = jnp.pad(lin_weight.astype(jnp.float32).T, ((0, pad), (0, 0)))
    return emb_pad, w_t.astype(jnp.bfloat16), lin_bias.astype(jnp.float32)


def cbow_forward(x, emb_table_pad, w_t_bf16, lin_bias, *, tb_max=256):
    """x: (B, C) int token indices; emb_table_pad: (V, D_pad) f32;
    w_t_bf16: (D_pad, V) bf16; lin_bias: (V,) f32. Returns (B, V) f32."""
    B, C = x.shape
    V, D_pad = emb_table_pad.shape
    assert w_t_bf16.shape == (D_pad, V)
    assert D_pad % 128 == 0

    # ---- B tile: as large as the (padded) batch allows, up to tb_max. ----
    B_pad8 = _round_up(B, 8)
    tb = tb_max if B_pad8 >= tb_max else B_pad8
    B_pad = _round_up(B, tb)
    nb = B_pad // tb

    # ---- Vocab tile: largest multiple of 128 dividing V, up to 1024. ----
    tn = V
    for cand in (1024, 512, 256, 128):
        if V % cand == 0:
            tn = cand
            break
    nv = V // tn

    # ---- VMEM budget from the actual chip (v7x has 64 MiB per TC). ----
    try:
        vmem_cap = int(pltpu.get_tpu_info().vmem_capacity_bytes)
    except Exception:
        vmem_cap = 64 * 1024 * 1024
    vmem_limit = min((vmem_cap * 3) // 4, 100 * 1024 * 1024)

    # Pad batch (pad rows use token 0; sliced off at the end) and flatten the
    # indices to 1-D for SMEM scalar prefetch (2-D SMEM pads lanes to 128).
    x = x.astype(jnp.int32)
    if B_pad != B:
        x = jnp.pad(x, ((0, B_pad - B), (0, 0)))
    x_flat = x.reshape(B_pad * C)

    bias2d = lin_bias.reshape(1, V).astype(jnp.float32)
    inv_c = 1.0 / C

    def cbow_kernel(x_smem, emb_ref, wt_ref, b_ref, o_ref, sum_sc, acts_sc):
        # x_smem:  (B_pad*C,) int32  flat indices in SMEM (scalar prefetch)
        # emb_ref: (V, D_pad) f32    full embedding table, resident in VMEM
        # wt_ref:  (D_pad, tn) bf16  tile of the transposed Linear weight
        # b_ref:   (1, tn)    f32    bias tile
        # o_ref:   (tb, tn)   f32    output tile
        # sum_sc:  (tb, D_pad) f32   per-row context sums (scratch)
        # acts_sc: (tb, D_pad) bf16  cached bf16 mean, persists over j (scratch)
        i = pl.program_id(0)   # B-tile index
        j = pl.program_id(1)   # vocab-tile index

        # Gather + mean + bf16 cast only once per B tile (j == 0).
        @pl.when(j == 0)
        def _gather():
            def row_body(r, carry):
                base = (i * tb + r) * C

                def ctx_body(c, acc):
                    tok = x_smem[base + c]
                    # Clamp to valid range: avoids unchecked OOB VMEM reads
                    # for bad / padded indices (PyTorch would raise; we clamp).
                    tok = jnp.clip(tok, 0, V - 1)
                    return acc + emb_ref[pl.ds(tok, 1), :]   # (1, D_pad) f32

                acc = lax.fori_loop(0, C, ctx_body,
                                    jnp.zeros((1, D_pad), jnp.float32),
                                    unroll=True)
                sum_sc[pl.ds(r, 1), :] = acc
                return carry

            lax.fori_loop(0, tb, row_body, 0, unroll=min(8, tb))
            # Hoisted 1/C scale + single bf16 cast for the whole B tile.
            acts_sc[...] = (sum_sc[...] * inv_c).astype(jnp.bfloat16)

        # Linear tile: (tb, D_pad) @ (D_pad, tn) on the MXU, bf16 in / f32 acc.
        o_ref[...] = jnp.dot(acts_sc[...], wt_ref[...],
                             preferred_element_type=jnp.float32) + b_ref[...]

    out = pl.pallas_call(
        cbow_kernel,
        out_shape=jax.ShapeDtypeStruct((B_pad, V), jnp.float32),
        grid_spec=pltpu.PrefetchScalarGridSpec(
            num_scalar_prefetch=1,                       # x_flat -> SMEM
            grid=(nb, nv),
            in_specs=[
                # Full embedding table, constant block index -> fetched once.
                pl.BlockSpec((V, D_pad), lambda i, j, xr: (0, 0)),
                # Transposed Linear weight, tiled along the vocab axis.
                pl.BlockSpec((D_pad, tn), lambda i, j, xr: (0, j)),
                # Bias tile.
                pl.BlockSpec((1, tn), lambda i, j, xr: (0, j)),
            ],
            out_specs=pl.BlockSpec((tb, tn), lambda i, j, xr: (i, j)),
            scratch_shapes=[pltpu.VMEM((tb, D_pad), jnp.float32),
                            pltpu.VMEM((tb, D_pad), jnp.bfloat16)],
        ),
        compiler_params=pltpu.CompilerParams(
            dimension_semantics=("parallel", "arbitrary"),
            vmem_limit_bytes=vmem_limit,
        ),
    )(x_flat, emb_table_pad, w_t_bf16, bias2d)

    return out[:B]


if __name__ == "__main__":
    # Small, deterministic configuration (matches the nn.Module layout).
    vocab_size = 128
    embedding_dim = 32
    batch = 2
    context = 8   # number of context tokens per example

    key = jax.random.PRNGKey(0)
    k_emb, k_w, k_b, k_x = jax.random.split(key, 4)

    # Parameters with nn.Embedding / nn.Linear shapes.
    emb_table = jax.random.normal(k_emb, (vocab_size, embedding_dim), jnp.float32)
    lin_weight = jax.random.normal(k_w, (vocab_size, embedding_dim), jnp.float32) * 0.1
    lin_bias = jax.random.normal(k_b, (vocab_size,), jnp.float32) * 0.1

    # Input token indices (B, C).
    x = jax.random.randint(k_x, (batch, context), 0, vocab_size, dtype=jnp.int32)

    # One-time parameter prep (kept outside the per-step forward).
    emb_pad, w_t_bf16, bias = prepare_cbow_params(emb_table, lin_weight, lin_bias)

    out = cbow_forward(x, emb_pad, w_t_bf16, bias)
    out = jax.block_until_ready(out)

    # Pure-JAX f32 reference (same math as the PyTorch module). bf16 weights /
    # activations in the kernel -> loosen tolerance vs the f32 reference.
    embeds_ref = jnp.take(emb_table, x, axis=0).mean(axis=1)          # (B, D)
    out_ref = embeds_ref @ lin_weight.T + lin_bias                    # (B, V)
    assert out.shape == (batch, vocab_size)
    assert jnp.allclose(out, out_ref, atol=2e-2, rtol=2e-2), "mismatch vs reference"

    print("KERNEL_OK")
</pallas_src>

<mosaic_0001>
module attributes {stable_mosaic.version = 11 : i64} {
  func.func @cbow_kernel(%arg0: i32, %arg1: i32, %arg2: memref<64xi32, #tpu.memory_space<smem>>, %arg3: memref<128x128xf32, #tpu.memory_space<vmem>>, %arg4: memref<128x128xbf16, #tpu.memory_space<vmem>>, %arg5: memref<1x128xf32, #tpu.memory_space<vmem>>, %arg6: memref<8x128xf32, #tpu.memory_space<vmem>>, %arg7: memref<8x128xf32, #tpu.memory_space<vmem>>, %arg8: memref<8x128xbf16, #tpu.memory_space<vmem>>) attributes {dimension_semantics = [#tpu.dimension_semantics<parallel>, #tpu.dimension_semantics<arbitrary>], iteration_bounds = array<i64: 1, 1>, scalar_prefetch = 1 : i64, scratch_operands = 2 : i64, tpu.core_type = #tpu.core_type<tc>, window_params = [{pipeline_mode = #tpu.pipeline_mode<synchronous>, transform_indices = @transform_0, window_bounds = array<i64: 128, 128>}, {transform_indices = @transform_1, window_bounds = array<i64: 128, 128>}, {transform_indices = @transform_2, window_bounds = array<i64: 1, 128>}, {transform_indices = @transform_3, window_bounds = array<i64: 8, 128>}]} {
    %c0_i32 = arith.constant 0 : i32
    %0 = arith.cmpi eq, %arg1, %c0_i32 : i32
    %1 = arith.extui %0 : i1 to i32
    %c0_i32_0 = arith.constant 0 : i32
    %2 = arith.cmpi ne, %1, %c0_i32_0 : i32
    scf.if %2 {
      %c0_i32_8 = arith.constant 0 : i32
      %c8_i32 = arith.constant 8 : i32
      %10 = arith.muli %arg0, %c8_i32 : i32
      %11 = arith.addi %10, %c0_i32_8 : i32
      %c8_i32_9 = arith.constant 8 : i32
      %12 = arith.muli %11, %c8_i32_9 : i32
      %cst_10 = arith.constant 0.000000e+00 : f32
      %13 = vector.broadcast %cst_10 : f32 to vector<1x128xf32>
      %c0_i32_11 = arith.constant 0 : i32
      %14 = arith.addi %12, %c0_i32_11 : i32
      %15 = arith.index_cast %14 : i32 to index
      %16 = memref.load %arg2[%15] : memref<64xi32, #tpu.memory_space<smem>>
      %c0_i32_12 = arith.constant 0 : i32
      %c127_i32 = arith.constant 127 : i32
      %17 = arith.maxsi %c0_i32_12, %16 : i32
      %18 = arith.minsi %c127_i32, %17 : i32
      %19 = arith.index_cast %18 : i32 to index
      %c0_13 = arith.constant 0 : index
      %20 = vector.load %arg3[%19, %c0_13] : memref<128x128xf32, #tpu.memory_space<vmem>>, vector<1x128xf32>
      %21 = arith.addf %13, %20 : vector<1x128xf32>
      %c1_i32 = arith.constant 1 : i32
      %22 = arith.addi %12, %c1_i32 : i32
      %23 = arith.index_cast %22 : i32 to index
      %24 = memref.load %arg2[%23] : memref<64xi32, #tpu.memory_space<smem>>
      %c0_i32_14 = arith.constant 0 : i32
      %c127_i32_15 = arith.constant 127 : i32
      %25 = arith.maxsi %c0_i32_14, %24 : i32
      %26 = arith.minsi %c127_i32_15, %25 : i32
      %27 = arith.index_cast %26 : i32 to index
      %c0_16 = arith.constant 0 : index
      %28 = vector.load %arg3[%27, %c0_16] : memref<128x128xf32, #tpu.memory_space<vmem>>, vector<1x128xf32>
      %29 = arith.addf %21, %28 : vector<1x128xf32>
      %c2_i32 = arith.constant 2 : i32
      %30 = arith.addi %12, %c2_i32 : i32
      %31 = arith.index_cast %30 : i32 to index
      %32 = memref.load %arg2[%31] : memref<64xi32, #tpu.memory_space<smem>>
      %c0_i32_17 = arith.constant 0 : i32
      %c127_i32_18 = arith.constant 127 : i32
      %33 = arith.maxsi %c0_i32_17, %32 : i32
      %34 = arith.minsi %c127_i32_18, %33 : i32
      %35 = arith.index_cast %34 : i32 to index
      %c0_19 = arith.constant 0 : index
      %36 = vector.load %arg3[%35, %c0_19] : memref<128x128xf32, #tpu.memory_space<vmem>>, vector<1x128xf32>
      %37 = arith.addf %29, %36 : vector<1x128xf32>
      %c3_i32 = arith.constant 3 : i32
      %38 = arith.addi %12, %c3_i32 : i32
      %39 = arith.index_cast %38 : i32 to index
      %40 = memref.load %arg2[%39] : memref<64xi32, #tpu.memory_space<smem>>
      %c0_i32_20 = arith.constant 0 : i32
      %c127_i32_21 = arith.constant 127 : i32
      %41 = arith.maxsi %c0_i32_20, %40 : i32
      %42 = arith.minsi %c127_i32_21, %41 : i32
      %43 = arith.index_cast %42 : i32 to index
      %c0_22 = arith.constant 0 : index
      %44 = vector.load %arg3[%43, %c0_22] : memref<128x128xf32, #tpu.memory_space<vmem>>, vector<1x128xf32>
      %45 = arith.addf %37, %44 : vector<1x128xf32>
      %c4_i32 = arith.constant 4 : i32
      %46 = arith.addi %12, %c4_i32 : i32
      %47 = arith.index_cast %46 : i32 to index
      %48 = memref.load %arg2[%47] : memref<64xi32, #tpu.memory_space<smem>>
      %c0_i32_23 = arith.constant 0 : i32
      %c127_i32_24 = arith.constant 127 : i32
      %49 = arith.maxsi %c0_i32_23, %48 : i32
      %50 = arith.minsi %c127_i32_24, %49 : i32
      %51 = arith.index_cast %50 : i32 to index
      %c0_25 = arith.constant 0 : index
      %52 = vector.load %arg3[%51, %c0_25] : memref<128x128xf32, #tpu.memory_space<vmem>>, vector<1x128xf32>
      %53 = arith.addf %45, %52 : vector<1x128xf32>
      %c5_i32 = arith.constant 5 : i32
      %54 = arith.addi %12, %c5_i32 : i32
      %55 = arith.index_cast %54 : i32 to index
      %56 = memref.load %arg2[%55] : memref<64xi32, #tpu.memory_space<smem>>
      %c0_i32_26 = arith.constant 0 : i32
      %c127_i32_27 = arith.constant 127 : i32
      %57 = arith.maxsi %c0_i32_26, %56 : i32
      %58 = arith.minsi %c127_i32_27, %57 : i32
      %59 = arith.index_cast %58 : i32 to index
      %c0_28 = arith.constant 0 : index
      %60 = vector.load %arg3[%59, %c0_28] : memref<128x128xf32, #tpu.memory_space<vmem>>, vector<1x128xf32>
      %61 = arith.addf %53, %60 : vector<1x128xf32>
      %c6_i32 = arith.constant 6 : i32
      %62 = arith.addi %12, %c6_i32 : i32
      %63 = arith.index_cast %62 : i32 to index
      %64 = memref.load %arg2[%63] : memref<64xi32, #tpu.memory_space<smem>>
      %c0_i32_29 = arith.constant 0 : i32
      %c127_i32_30 = arith.constant 127 : i32
      %65 = arith.maxsi %c0_i32_29, %64 : i32
      %66 = arith.minsi %c127_i32_30, %65 : i32
      %67 = arith.index_cast %66 : i32 to index
      %c0_31 = arith.constant 0 : index
      %68 = vector.load %arg3[%67, %c0_31] : memref<128x128xf32, #tpu.memory_space<vmem>>, vector<1x128xf32>
      %69 = arith.addf %61, %68 : vector<1x128xf32>
      %c7_i32 = arith.constant 7 : i32
      %70 = arith.addi %12, %c7_i32 : i32
      %71 = arith.index_cast %70 : i32 to index
      %72 = memref.load %arg2[%71] : memref<64xi32, #tpu.memory_space<smem>>
      %c0_i32_32 = arith.constant 0 : i32
      %c127_i32_33 = arith.constant 127 : i32
      %73 = arith.maxsi %c0_i32_32, %72 : i32
      %74 = arith.minsi %c127_i32_33, %73 : i32
      %75 = arith.index_cast %74 : i32 to index
      %c0_34 = arith.constant 0 : index
      %76 = vector.load %arg3[%75, %c0_34] : memref<128x128xf32, #tpu.memory_space<vmem>>, vector<1x128xf32>
      %77 = arith.addf %69, %76 : vector<1x128xf32>
      %c8_i32_35 = arith.constant 8 : i32
      %78 = arith.index_cast %c0_i32_8 : i32 to index
      %c0_36 = arith.constant 0 : index
      %79 = vector.load %arg7[%78, %c0_36] : memref<8x128xf32, #tpu.memory_space<vmem>>, vector<1x128xf32>
      tpu.vector_store %arg7[%78, %c0_36], %77 {strides = array<i32>} : memref<8x128xf32, #tpu.memory_space<vmem>>, vector<1x128xf32>,
      %c1_i32_37 = arith.constant 1 : i32
      %c8_i32_38 = arith.constant 8 : i32
      %80 = arith.muli %arg0, %c8_i32_38 : i32
      %81 = arith.addi %80, %c1_i32_37 : i32
      %c8_i32_39 = arith.constant 8 : i32
      %82 = arith.muli %81, %c8_i32_39 : i32
      %cst_40 = arith.constant 0.000000e+00 : f32
      %83 = vector.broadcast %cst_40 : f32 to vector<1x128xf32>
      %c0_i32_41 = arith.constant 0 : i32
      %84 = arith.addi %82, %c0_i32_41 : i32
      %85 = arith.index_cast %84 : i32 to index
      %86 = memref.load %arg2[%85] : memref<64xi32, #tpu.memory_space<smem>>
      %c0_i32_42 = arith.constant 0 : i32
      %c127_i32_43 = arith.constant 127 : i32
      %87 = arith.maxsi %c0_i32_42, %86 : i32
      %88 = arith.minsi %c127_i32_43, %87 : i32
      %89 = arith.index_cast %88 : i32 to index
      %c0_44 = arith.constant 0 : index
      %90 = vector.load %arg3[%89, %c0_44] : memref<128x128xf32, #tpu.memory_space<vmem>>, vector<1x128xf32>
      %91 = arith.addf %83, %90 : vector<1x128xf32>
      %c1_i32_45 = arith.constant 1 : i32
      %92 = arith.addi %82, %c1_i32_45 : i32
      %93 = arith.index_cast %92 : i32 to index
      %94 = memref.load %arg2[%93] : memref<64xi32, #tpu.memory_space<smem>>
      %c0_i32_46 = arith.constant 0 : i32
      %c127_i32_47 = arith.constant 127 : i32
      %95 = arith.maxsi %c0_i32_46, %94 : i32
      %96 = arith.minsi %c127_i32_47, %95 : i32
      %97 = arith.index_cast %96 : i32 to index
      %c0_48 = arith.constant 0 : index
      %98 = vector.load %arg3[%97, %c0_48] : memref<128x128xf32, #tpu.memory_space<vmem>>, vector<1x128xf32>
      %99 = arith.addf %91, %98 : vector<1x128xf32>
      %c2_i32_49 = arith.constant 2 : i32
      %100 = arith.addi %82, %c2_i32_49 : i32
      %101 = arith.index_cast %100 : i32 to index
      %102 = memref.load %arg2[%101] : memref<64xi32, #tpu.memory_space<smem>>
      %c0_i32_50 = arith.constant 0 : i32
      %c127_i32_51 = arith.constant 127 : i32
      %103 = arith.maxsi %c0_i32_50, %102 : i32
      %104 = arith.minsi %c127_i32_51, %103 : i32
      %105 = arith.index_cast %104 : i32 to index
      %c0_52 = arith.constant 0 : index
      %106 = vector.load %arg3[%105, %c0_52] : memref<128x128xf32, #tpu.memory_space<vmem>>, vector<1x128xf32>
      %107 = arith.addf %99, %106 : vector<1x128xf32>
      %c3_i32_53 = arith.constant 3 : i32
      %108 = arith.addi %82, %c3_i32_53 : i32
      %109 = arith.index_cast %108 : i32 to index
      %110 = memref.load %arg2[%109] : memref<64xi32, #tpu.memory_space<smem>>
      %c0_i32_54 = arith.constant 0 : i32
      %c127_i32_55 = arith.constant 127 : i32
      %111 = arith.maxsi %c0_i32_54, %110 : i32
      %112 = arith.minsi %c127_i32_55, %111 : i32
      %113 = arith.index_cast %112 : i32 to index
      %c0_56 = arith.constant 0 : index
      %114 = vector.load %arg3[%113, %c0_56] : memref<128x128xf32, #tpu.memory_space<vmem>>, vector<1x128xf32>
      %115 = arith.addf %107, %114 : vector<1x128xf32>
      %c4_i32_57 = arith.constant 4 : i32
      %116 = arith.addi %82, %c4_i32_57 : i32
      %117 = arith.index_cast %116 : i32 to index
      %118 = memref.load %arg2[%117] : memref<64xi32, #tpu.memory_space<smem>>
      %c0_i32_58 = arith.constant 0 : i32
      %c127_i32_59 = arith.constant 127 : i32
      %119 = arith.maxsi %c0_i32_58, %118 : i32
      %120 = arith.minsi %c127_i32_59, %119 : i32
      %121 = arith.index_cast %120 : i32 to index
      %c0_60 = arith.constant 0 : index
      %122 = vector.load %arg3[%121, %c0_60] : memref<128x128xf32, #tpu.memory_space<vmem>>, vector<1x128xf32>
      %123 = arith.addf %115, %122 : vector<1x128xf32>
      %c5_i32_61 = arith.constant 5 : i32
      %124 = arith.addi %82, %c5_i32_61 : i32
      %125 = arith.index_cast %124 : i32 to index
      %126 = memref.load %arg2[%125] : memref<64xi32, #tpu.memory_space<smem>>
      %c0_i32_62 = arith.constant 0 : i32
      %c127_i32_63 = arith.constant 127 : i32
      %127 = arith.maxsi %c0_i32_62, %126 : i32
      %128 = arith.minsi %c127_i32_63, %127 : i32
      %129 = arith.index_cast %128 : i32 to index
      %c0_64 = arith.constant 0 : index
      %130 = vector.load %arg3[%129, %c0_64] : memref<128x128xf32, #tpu.memory_space<vmem>>, vector<1x128xf32>
      %131 = arith.addf %123, %130 : vector<1x128xf32>
      %c6_i32_65 = arith.constant 6 : i32
      %132 = arith.addi %82, %c6_i32_65 : i32
      %133 = arith.index_cast %132 : i32 to index
      %134 = memref.load %arg2[%133] : memref<64xi32, #tpu.memory_space<smem>>
      %c0_i32_66 = arith.constant 0 : i32
      %c127_i32_67 = arith.constant 127 : i32
      %135 = arith.maxsi %c0_i32_66, %134 : i32
      %136 = arith.minsi %c127_i32_67, %135 : i32
      %137 = arith.index_cast %136 : i32 to index
      %c0_68 = arith.constant 0 : index
      %138 = vector.load %arg3[%137, %c0_68] : memref<128x128xf32, #tpu.memory_space<vmem>>, vector<1x128xf32>
      %139 = arith.addf %131, %138 : vector<1x128xf32>
      %c7_i32_69 = arith.constant 7 : i32
      %140 = arith.addi %82, %c7_i32_69 : i32
      %141 = arith.index_cast %140 : i32 to index
      %142 = memref.load %arg2[%141] : memref<64xi32, #tpu.memory_space<smem>>
      %c0_i32_70 = arith.constant 0 : i32
      %c127_i32_71 = arith.constant 127 : i32
      %143 = arith.maxsi %c0_i32_70, %142 : i32
      %144 = arith.minsi %c127_i32_71, %143 : i32
      %145 = arith.index_cast %144 : i32 to index
      %c0_72 = arith.constant 0 : index
      %146 = vector.load %arg3[%145, %c0_72] : memref<128x128xf32, #tpu.memory_space<vmem>>, vector<1x128xf32>
      %147 = arith.addf %139, %146 : vector<1x128xf32>
      %c8_i32_73 = arith.constant 8 : i32
      %148 = arith.index_cast %c1_i32_37 : i32 to index
      %c0_74 = arith.constant 0 : index
      %149 = vector.load %arg7[%148, %c0_74] : memref<8x128xf32, #tpu.memory_space<vmem>>, vector<1x128xf32>
      tpu.vector_store %arg7[%148, %c0_74], %147 {strides = array<i32>} : memref<8x128xf32, #tpu.memory_space<vmem>>, vector<1x128xf32>,
      %c2_i32_75 = arith.constant 2 : i32
      %c8_i32_76 = arith.constant 8 : i32
      %150 = arith.muli %arg0, %c8_i32_76 : i32
      %151 = arith.addi %150, %c2_i32_75 : i32
      %c8_i32_77 = arith.constant 8 : i32
      %152 = arith.muli %151, %c8_i32_77 : i32
      %cst_78 = arith.constant 0.000000e+00 : f32
      %153 = vector.broadcast %cst_78 : f32 to vector<1x128xf32>
      %c0_i32_79 = arith.constant 0 : i32
      %154 = arith.addi %152, %c0_i32_79 : i32
      %155 = arith.index_cast %154 : i32 to index
      %156 = memref.load %arg2[%155] : memref<64xi32, #tpu.memory_space<smem>>
      %c0_i32_80 = arith.constant 0 : i32
      %c127_i32_81 = arith.constant 127 : i32
      %157 = arith.maxsi %c0_i32_80, %156 : i32
      %158 = arith.minsi %c127_i32_81, %157 : i32
      %159 = arith.index_cast %158 : i32 to index
      %c0_82 = arith.constant 0 : index
      %160 = vector.load %arg3[%159, %c0_82] : memref<128x128xf32, #tpu.memory_space<vmem>>, vector<1x128xf32>
      %161 = arith.addf %153, %160 : vector<1x128xf32>
      %c1_i32_83 = arith.constant 1 : i32
      %162 = arith.addi %152, %c1_i32_83 : i32
      %163 = arith.index_cast %162 : i32 to index
      %164 = memref.load %arg2[%163] : memref<64xi32, #tpu.memory_space<smem>>
      %c0_i32_84 = arith.constant 0 : i32
      %c127_i32_85 = arith.constant 127 : i32
      %165 = arith.maxsi %c0_i32_84, %164 : i32
      %166 = arith.minsi %c127_i32_85, %165 : i32
      %167 = arith.index_cast %166 : i32 to index
      %c0_86 = arith.constant 0 : index
      %168 = vector.load %arg3[%167, %c0_86] : memref<128x128xf32, #tpu.memory_space<vmem>>, vector<1x128xf32>
      %169 = arith.addf %161, %168 : vector<1x128xf32>
      %c2_i32_87 = arith.constant 2 : i32
      %170 = arith.addi %152, %c2_i32_87 : i32
      %171 = arith.index_cast %170 : i32 to index
      %172 = memref.load %arg2[%171] : memref<64xi32, #tpu.memory_space<smem>>
      %c0_i32_88 = arith.constant 0 : i32
      %c127_i32_89 = arith.constant 127 : i32
      %173 = arith.maxsi %c0_i32_88, %172 : i32
      %174 = arith.minsi %c127_i32_89, %173 : i32
      %175 = arith.index_cast %174 : i32 to index
      %c0_90 = arith.constant 0 : index
      %176 = vector.load %arg3[%175, %c0_90] : memref<128x128xf32, #tpu.memory_space<vmem>>, vector<1x128xf32>
      %177 = arith.addf %169, %176 : vector<1x128xf32>
      %c3_i32_91 = arith.constant 3 : i32
      %178 = arith.addi %152, %c3_i32_91 : i32
      %179 = arith.index_cast %178 : i32 to index
      %180 = memref.load %arg2[%179] : memref<64xi32, #tpu.memory_space<smem>>
      %c0_i32_92 = arith.constant 0 : i32
      %c127_i32_93 = arith.constant 127 : i32
      %181 = arith.maxsi %c0_i32_92, %180 : i32
      %182 = arith.minsi %c127_i32_93, %181 : i32
      %183 = arith.index_cast %182 : i32 to index
      %c0_94 = arith.constant 0 : index
      %184 = vector.load %arg3[%183, %c0_94] : memref<128x128xf32, #tpu.memory_space<vmem>>, vector<1x128xf32>
      %185 = arith.addf %177, %184 : vector<1x128xf32>
      %c4_i32_95 = arith.constant 4 : i32
      %186 = arith.addi %152, %c4_i32_95 : i32
      %187 = arith.index_cast %186 : i32 to index
      %188 = memref.load %arg2[%187] : memref<64xi32, #tpu.memory_space<smem>>
      %c0_i32_96 = arith.constant 0 : i32
      %c127_i32_97 = arith.constant 127 : i32
      %189 = arith.maxsi %c0_i32_96, %188 : i32
      %190 = arith.minsi %c127_i32_97, %189 : i32
      %191 = arith.index_cast %190 : i32 to index
      %c0_98 = arith.constant 0 : index
      %192 = vector.load %arg3[%191, %c0_98] : memref<128x128xf32, #tpu.memory_space<vmem>>, vector<1x128xf32>
      %193 = arith.addf %185, %192 : vector<1x128xf32>
      %c5_i32_99 = arith.constant 5 : i32
      %194 = arith.addi %152, %c5_i32_99 : i32
      %195 = arith.index_cast %194 : i32 to index
      %196 = memref.load %arg2[%195] : memref<64xi32, #tpu.memory_space<smem>>
      %c0_i32_100 = arith.constant 0 : i32
      %c127_i32_101 = arith.constant 127 : i32
      %197 = arith.maxsi %c0_i32_100, %196 : i32
      %198 = arith.minsi %c127_i32_101, %197 : i32
      %199 = arith.index_cast %198 : i32 to index
      %c0_102 = arith.constant 0 : index
      %200 = vector.load %arg3[%199, %c0_102] : memref<128x128xf32, #tpu.memory_space<vmem>>, vector<1x128xf32>
      %201 = arith.addf %193, %200 : vector<1x128xf32>
      %c6_i32_103 = arith.constant 6 : i32
      %202 = arith.addi %152, %c6_i32_103 : i32
      %203 = arith.index_cast %202 : i32 to index
      %204 = memref.load %arg2[%203] : memref<64xi32, #tpu.memory_space<smem>>
      %c0_i32_104 = arith.constant 0 : i32
      %c127_i32_105 = arith.constant 127 : i32
      %205 = arith.maxsi %c0_i32_104, %204 : i32
      %206 = arith.minsi %c127_i32_105, %205 : i32
      %207 = arith.index_cast %206 : i32 to index
      %c0_106 = arith.constant 0 : index
      %208 = vector.load %arg3[%207, %c0_106] : memref<128x128xf32, #tpu.memory_space<vmem>>, vector<1x128xf32>
      %209 = arith.addf %201, %208 : vector<1x128xf32>
      %c7_i32_107 = arith.constant 7 : i32
      %210 = arith.addi %152, %c7_i32_107 : i32
      %211 = arith.index_cast %210 : i32 to index
      %212 = memref.load %arg2[%211] : memref<64xi32, #tpu.memory_space<smem>>
      %c0_i32_108 = arith.constant 0 : i32
      %c127_i32_109 = arith.constant 127 : i32
      %213 = arith.maxsi %c0_i32_108, %212 : i32
      %214 = arith.minsi %c127_i32_109, %213 : i32
      %215 = arith.index_cast %214 : i32 to index
      %c0_110 = arith.constant 0 : index
      %216 = vector.load %arg3[%215, %c0_110] : memref<128x128xf32, #tpu.memory_space<vmem>>, vector<1x128xf32>
      %217 = arith.addf %209, %216 : vector<1x128xf32>
      %c8_i32_111 = arith.constant 8 : i32
      %218 = arith.index_cast %c2_i32_75 : i32 to index
      %c0_112 = arith.constant 0 : index
      %219 = vector.load %arg7[%218, %c0_112] : memref<8x128xf32, #tpu.memory_space<vmem>>, vector<1x128xf32>
      tpu.vector_store %arg7[%218, %c0_112], %217 {strides = array<i32>} : memref<8x128xf32, #tpu.memory_space<vmem>>, vector<1x128xf32>,
      %c3_i32_113 = arith.constant 3 : i32
      %c8_i32_114 = arith.constant 8 : i32
      %220 = arith.muli %arg0, %c8_i32_114 : i32
      %221 = arith.addi %220, %c3_i32_113 : i32
      %c8_i32_115 = arith.constant 8 : i32
      %222 = arith.muli %221, %c8_i32_115 : i32
      %cst_116 = arith.constant 0.000000e+00 : f32
      %223 = vector.broadcast %cst_116 : f32 to vector<1x128xf32>
      %c0_i32_117 = arith.constant 0 : i32
      %224 = arith.addi %222, %c0_i32_117 : i32
      %225 = arith.index_cast %224 : i32 to index
      %226 = memref.load %arg2[%225] : memref<64xi32, #tpu.memory_space<smem>>
      %c0_i32_118 = arith.constant 0 : i32
      %c127_i32_119 = arith.constant 127 : i32
      %227 = arith.maxsi %c0_i32_118, %226 : i32
      %228 = arith.minsi %c127_i32_119, %227 : i32
      %229 = arith.index_cast %228 : i32 to index
      %c0_120 = arith.constant 0 : index
      %230 = vector.load %arg3[%229, %c0_120] : memref<128x128xf32, #tpu.memory_space<vmem>>, vector<1x128xf32>
      %231 = arith.addf %223, %230 : vector<1x128xf32>
      %c1_i32_121 = arith.constant 1 : i32
      %232 = arith.addi %222, %c1_i32_121 : i32
      %233 = arith.index_cast %232 : i32 to index
      %234 = memref.load %arg2[%233] : memref<64xi32, #tpu.memory_space<smem>>
      %c0_i32_122 = arith.constant 0 : i32
      %c127_i32_123 = arith.constant 127 : i32
      %235 = arith.maxsi %c0_i32_122, %234 : i32
      %236 = arith.minsi %c127_i32_123, %235 : i32
      %237 = arith.index_cast %236 : i32 to index
      %c0_124 = arith.constant 0 : index
      %238 = vector.load %arg3[%237, %c0_124] : memref<128x128xf32, #tpu.memory_space<vmem>>, vector<1x128xf32>
      %239 = arith.addf %231, %238 : vector<1x128xf32>
      %c2_i32_125 = arith.constant 2 : i32
      %240 = arith.addi %222, %c2_i32_125 : i32
      %241 = arith.index_cast %240 : i32 to index
      %242 = memref.load %arg2[%241] : memref<64xi32, #tpu.memory_space<smem>>
      %c0_i32_126 = arith.constant 0 : i32
      %c127_i32_127 = arith.constant 127 : i32
      %243 = arith.maxsi %c0_i32_126, %242 : i32
      %244 = arith.minsi %c127_i32_127, %243 : i32
      %245 = arith.index_cast %244 : i32 to index
      %c0_128 = arith.constant 0 : index
      %246 = vector.load %arg3[%245, %c0_128] : memref<128x128xf32, #tpu.memory_space<vmem>>, vector<1x128xf32>
      %247 = arith.addf %239, %246 : vector<1x128xf32>
      %c3_i32_129 = arith.constant 3 : i32
      %248 = arith.addi %222, %c3_i32_129 : i32
      %249 = arith.index_cast %248 : i32 to index
      %250 = memref.load %arg2[%249] : memref<64xi32, #tpu.memory_space<smem>>
      %c0_i32_130 = arith.constant 0 : i32
      %c127_i32_131 = arith.constant 127 : i32
      %251 = arith.maxsi %c0_i32_130, %250 : i32
      %252 = arith.minsi %c127_i32_131, %251 : i32
      %253 = arith.index_cast %252 : i32 to index
      %c0_132 = arith.constant 0 : index
      %254 = vector.load %arg3[%253, %c0_132] : memref<128x128xf32, #tpu.memory_space<vmem>>, vector<1x128xf32>
      %255 = arith.addf %247, %254 : vector<1x128xf32>
      %c4_i32_133 = arith.constant 4 : i32
      %256 = arith.addi %222, %c4_i32_133 : i32
      %257 = arith.index_cast %256 : i32 to index
      %258 = memref.load %arg2[%257] : memref<64xi32, #tpu.memory_space<smem>>
      %c0_i32_134 = arith.constant 0 : i32
      %c127_i32_135 = arith.constant 127 : i32
      %259 = arith.maxsi %c0_i32_134, %258 : i32
      %260 = arith.minsi %c127_i32_135, %259 : i32
      %261 = arith.index_cast %260 : i32 to index
      %c0_136 = arith.constant 0 : index
      %262 = vector.load %arg3[%261, %c0_136] : memref<128x128xf32, #tpu.memory_space<vmem>>, vector<1x128xf32>
      %263 = arith.addf %255, %262 : vector<1x128xf32>
      %c5_i32_137 = arith.constant 5 : i32
      %264 = arith.addi %222, %c5_i32_137 : i32
      %265 = arith.index_cast %264 : i32 to index
      %266 = memref.load %arg2[%265] : memref<64xi32, #tpu.memory_space<smem>>
      %c0_i32_138 = arith.constant 0 : i32
      %c127_i32_139 = arith.constant 127 : i32
      %267 = arith.maxsi %c0_i32_138, %266 : i32
      %268 = arith.minsi %c127_i32_139, %267 : i32
      %269 = arith.index_cast %268 : i32 to index
      %c0_140 = arith.constant 0 : index
      %270 = vector.load %arg3[%269, %c0_140] : memref<128x128xf32, #tpu.memory_space<vmem>>, vector<1x128xf32>
      %271 = arith.addf %263, %270 : vector<1x128xf32>
      %c6_i32_141 = arith.constant 6 : i32
      %272 = arith.addi %222, %c6_i32_141 : i32
      %273 = arith.index_cast %272 : i32 to index
      %274 = memref.load %arg2[%273] : memref<64xi32, #tpu.memory_space<smem>>
      %c0_i32_142 = arith.constant 0 : i32
      %c127_i32_143 = arith.constant 127 : i32
      %275 = arith.maxsi %c0_i32_142, %274 : i32
      %276 = arith.minsi %c127_i32_143, %275 : i32
      %277 = arith.index_cast %276 : i32 to index
      %c0_144 = arith.constant 0 : index
      %278 = vector.load %arg3[%277, %c0_144] : memref<128x128xf32, #tpu.memory_space<vmem>>, vector<1x128xf32>
      %279 = arith.addf %271, %278 : vector<1x128xf32>
      %c7_i32_145 = arith.constant 7 : i32
      %280 = arith.addi %222, %c7_i32_145 : i32
      %281 = arith.index_cast %280 : i32 to index
      %282 = memref.load %arg2[%281] : memref<64xi32, #tpu.memory_space<smem>>
      %c0_i32_146 = arith.constant 0 : i32
      %c127_i32_147 = arith.constant 127 : i32
      %283 = arith.maxsi %c0_i32_146, %282 : i32
      %284 = arith.minsi %c127_i32_147, %283 : i32
      %285 = arith.index_cast %284 : i32 to index
      %c0_148 = arith.constant 0 : index
      %286 = vector.load %arg3[%285, %c0_148] : memref<128x128xf32, #tpu.memory_space<vmem>>, vector<1x128xf32>
      %287 = arith.addf %279, %286 : vector<1x128xf32>
      %c8_i32_149 = arith.constant 8 : i32
      %288 = arith.index_cast %c3_i32_113 : i32 to index
      %c0_150 = arith.constant 0 : index
      %289 = vector.load %arg7[%288, %c0_150] : memref<8x128xf32, #tpu.memory_space<vmem>>, vector<1x128xf32>
      tpu.vector_store %arg7[%288, %c0_150], %287 {strides = array<i32>} : memref<8x128xf32, #tpu.memory_space<vmem>>, vector<1x128xf32>,
      %c4_i32_151 = arith.constant 4 : i32
      %c8_i32_152 = arith.constant 8 : i32
      %290 = arith.muli %arg0, %c8_i32_152 : i32
      %291 = arith.addi %290, %c4_i32_151 : i32
      %c8_i32_153 = arith.constant 8 : i32
      %292 = arith.muli %291, %c8_i32_153 : i32
      %cst_154 = arith.constant 0.000000e+00 : f32
      %293 = vector.broadcast %cst_154 : f32 to vector<1x128xf32>
      %c0_i32_155 = arith.constant 0 : i32
      %294 = arith.addi %292, %c0_i32_155 : i32
      %295 = arith.index_cast %294 : i32 to index
      %296 = memref.load %arg2[%295] : memref<64xi32, #tpu.memory_space<smem>>
      %c0_i32_156 = arith.constant 0 : i32
      %c127_i32_157 = arith.constant 127 : i32
      %297 = arith.maxsi %c0_i32_156, %296 : i32
      %298 = arith.minsi %c127_i32_157, %297 : i32
      %299 = arith.index_cast %298 : i32 to index
      %c0_158 = arith.constant 0 : index
      %300 = vector.load %arg3[%299, %c0_158] : memref<128x128xf32, #tpu.memory_space<vmem>>, vector<1x128xf32>
      %301 = arith.addf %293, %300 : vector<1x128xf32>
      %c1_i32_159 = arith.constant 1 : i32
      %302 = arith.addi %292, %c1_i32_159 : i32
      %303 = arith.index_cast %302 : i32 to index
      %304 = memref.load %arg2[%303] : memref<64xi32, #tpu.memory_space<smem>>
      %c0_i32_160 = arith.constant 0 : i32
      %c127_i32_161 = arith.constant 127 : i32
      %305 = arith.maxsi %c0_i32_160, %304 : i32
      %306 = arith.minsi %c127_i32_161, %305 : i32
      %307 = arith.index_cast %306 : i32 to index
      %c0_162 = arith.constant 0 : index
      %308 = vector.load %arg3[%307, %c0_162] : memref<128x128xf32, #tpu.memory_space<vmem>>, vector<1x128xf32>
      %309 = arith.addf %301, %308 : vector<1x128xf32>
      %c2_i32_163 = arith.constant 2 : i32
      %310 = arith.addi %292, %c2_i32_163 : i32
      %311 = arith.index_cast %310 : i32 to index
      %312 = memref.load %arg2[%311] : memref<64xi32, #tpu.memory_space<smem>>
      %c0_i32_164 = arith.constant 0 : i32
      %c127_i32_165 = arith.constant 127 : i32
      %313 = arith.maxsi %c0_i32_164, %312 : i32
      %314 = arith.minsi %c127_i32_165, %313 : i32
      %315 = arith.index_cast %314 : i32 to index
      %c0_166 = arith.constant 0 : index
      %316 = vector.load %arg3[%315, %c0_166] : memref<128x128xf32, #tpu.memory_space<vmem>>, vector<1x128xf32>
      %317 = arith.addf %309, %316 : vector<1x128xf32>
      %c3_i32_167 = arith.constant 3 : i32
      %318 = arith.addi %292, %c3_i32_167 : i32
      %319 = arith.index_cast %318 : i32 to index
      %320 = memref.load %arg2[%319] : memref<64xi32, #tpu.memory_space<smem>>
      %c0_i32_168 = arith.constant 0 : i32
      %c127_i32_169 = arith.constant 127 : i32
      %321 = arith.maxsi %c0_i32_168, %320 : i32
      %322 = arith.minsi %c127_i32_169, %321 : i32
      %323 = arith.index_cast %322 : i32 to index
      %c0_170 = arith.constant 0 : index
      %324 = vector.load %arg3[%323, %c0_170] : memref<128x128xf32, #tpu.memory_space<vmem>>, vector<1x128xf32>
      %325 = arith.addf %317, %324 : vector<1x128xf32>
      %c4_i32_171 = arith.constant 4 : i32
      %326 = arith.addi %292, %c4_i32_171 : i32
      %327 = arith.index_cast %326 : i32 to index
      %328 = memref.load %arg2[%327] : memref<64xi32, #tpu.memory_space<smem>>
      %c0_i32_172 = arith.constant 0 : i32
      %c127_i32_173 = arith.constant 127 : i32
      %329 = arith.maxsi %c0_i32_172, %328 : i32
      %330 = arith.minsi %c127_i32_173, %329 : i32
      %331 = arith.index_cast %330 : i32 to index
      %c0_174 = arith.constant 0 : index
      %332 = vector.load %arg3[%331, %c0_174] : memref<128x128xf32, #tpu.memory_space<vmem>>, vector<1x128xf32>
      %333 = arith.addf %325, %332 : vector<1x128xf32>
      %c5_i32_175 = arith.constant 5 : i32
      %334 = arith.addi %292, %c5_i32_175 : i32
      %335 = arith.index_cast %334 : i32 to index
      %336 = memref.load %arg2[%335] : memref<64xi32, #tpu.memory_space<smem>>
      %c0_i32_176 = arith.constant 0 : i32
      %c127_i32_177 = arith.constant 127 : i32
      %337 = arith.maxsi %c0_i32_176, %336 : i32
      %338 = arith.minsi %c127_i32_177, %337 : i32
      %339 = arith.index_cast %338 : i32 to index
      %c0_178 = arith.constant 0 : index
      %340 = vector.load %arg3[%339, %c0_178] : memref<128x128xf32, #tpu.memory_space<vmem>>, vector<1x128xf32>
      %341 = arith.addf %333, %340 : vector<1x128xf32>
      %c6_i32_179 = arith.constant 6 : i32
      %342 = arith.addi %292, %c6_i32_179 : i32
      %343 = arith.index_cast %342 : i32 to index
      %344 = memref.load %arg2[%343] : memref<64xi32, #tpu.memory_space<smem>>
      %c0_i32_180 = arith.constant 0 : i32
      %c127_i32_181 = arith.constant 127 : i32
      %345 = arith.maxsi %c0_i32_180, %344 : i32
      %346 = arith.minsi %c127_i32_181, %345 : i32
      %347 = arith.index_cast %346 : i32 to index
      %c0_182 = arith.constant 0 : index
      %348 = vector.load %arg3[%347, %c0_182] : memref<128x128xf32, #tpu.memory_space<vmem>>, vector<1x128xf32>
      %349 = arith.addf %341, %348 : vector<1x128xf32>
      %c7_i32_183 = arith.constant 7 : i32
      %350 = arith.addi %292, %c7_i32_183 : i32
      %351 = arith.index_cast %350 : i32 to index
      %352 = memref.load %arg2[%351] : memref<64xi32, #tpu.memory_space<smem>>
      %c0_i32_184 = arith.constant 0 : i32
      %c127_i32_185 = arith.constant 127 : i32
      %353 = arith.maxsi %c0_i32_184, %352 : i32
      %354 = arith.minsi %c127_i32_185, %353 : i32
      %355 = arith.index_cast %354 : i32 to index
      %c0_186 = arith.constant 0 : index
      %356 = vector.load %arg3[%355, %c0_186] : memref<128x128xf32, #tpu.memory_space<vmem>>, vector<1x128xf32>
      %357 = arith.addf %349, %356 : vector<1x128xf32>
      %c8_i32_187 = arith.constant 8 : i32
      %358 = arith.index_cast %c4_i32_151 : i32 to index
      %c0_188 = arith.constant 0 : index
      %359 = vector.load %arg7[%358, %c0_188] : memref<8x128xf32, #tpu.memory_space<vmem>>, vector<1x128xf32>
      tpu.vector_store %arg7[%358, %c0_188], %357 {strides = array<i32>} : memref<8x128xf32, #tpu.memory_space<vmem>>, vector<1x128xf32>,
      %c5_i32_189 = arith.constant 5 : i32
      %c8_i32_190 = arith.constant 8 : i32
      %360 = arith.muli %arg0, %c8_i32_190 : i32
      %361 = arith.addi %360, %c5_i32_189 : i32
      %c8_i32_191 = arith.constant 8 : i32
      %362 = arith.muli %361, %c8_i32_191 : i32
      %cst_192 = arith.constant 0.000000e+00 : f32
      %363 = vector.broadcast %cst_192 : f32 to vector<1x128xf32>
      %c0_i32_193 = arith.constant 0 : i32
      %364 = arith.addi %362, %c0_i32_193 : i32
      %365 = arith.index_cast %364 : i32 to index
      %366 = memref.load %arg2[%365] : memref<64xi32, #tpu.memory_space<smem>>
      %c0_i32_194 = arith.constant 0 : i32
      %c127_i32_195 = arith.constant 127 : i32
      %367 = arith.maxsi %c0_i32_194, %366 : i32
      %368 = arith.minsi %c127_i32_195, %367 : i32
      %369 = arith.index_cast %368 : i32 to index
      %c0_196 = arith.constant 0 : index
      %370 = vector.load %arg3[%369, %c0_196] : memref<128x128xf32, #tpu.memory_space<vmem>>, vector<1x128xf32>
      %371 = arith.addf %363, %370 : vector<1x128xf32>
      %c1_i32_197 = arith.constant 1 : i32
      %372 = arith.addi %362, %c1_i32_197 : i32
      %373 = arith.index_cast %372 : i32 to index
      %374 = memref.load %arg2[%373] : memref<64xi32, #tpu.memory_space<smem>>
      %c0_i32_198 = arith.constant 0 : i32
      %c127_i32_199 = arith.constant 127 : i32
      %375 = arith.maxsi %c0_i32_198, %374 : i32
      %376 = arith.minsi %c127_i32_199, %375 : i32
      %377 = arith.index_cast %376 : i32 to index
      %c0_200 = arith.constant 0 : index
      %378 = vector.load %arg3[%377, %c0_200] : memref<128x128xf32, #tpu.memory_space<vmem>>, vector<1x128xf32>
      %379 = arith.addf %371, %378 : vector<1x128xf32>
      %c2_i32_201 = arith.constant 2 : i32
      %380 = arith.addi %362, %c2_i32_201 : i32
      %381 = arith.index_cast %380 : i32 to index
      %382 = memref.load %arg2[%381] : memref<64xi32, #tpu.memory_space<smem>>
      %c0_i32_202 = arith.constant 0 : i32
      %c127_i32_203 = arith.constant 127 : i32
      %383 = arith.maxsi %c0_i32_202, %382 : i32
      %384 = arith.minsi %c127_i32_203, %383 : i32
      %385 = arith.index_cast %384 : i32 to index
      %c0_204 = arith.constant 0 : index
      %386 = vector.load %arg3[%385, %c0_204] : memref<128x128xf32, #tpu.memory_space<vmem>>, vector<1x128xf32>
      %387 = arith.addf %379, %386 : vector<1x128xf32>
      %c3_i32_205 = arith.constant 3 : i32
      %388 = arith.addi %362, %c3_i32_205 : i32
      %389 = arith.index_cast %388 : i32 to index
      %390 = memref.load %arg2[%389] : memref<64xi32, #tpu.memory_space<smem>>
      %c0_i32_206 = arith.constant 0 : i32
      %c127_i32_207 = arith.constant 127 : i32
      %391 = arith.maxsi %c0_i32_206, %390 : i32
      %392 = arith.minsi %c127_i32_207, %391 : i32
      %393 = arith.index_cast %392 : i32 to index
      %c0_208 = arith.constant 0 : index
      %394 = vector.load %arg3[%393, %c0_208] : memref<128x128xf32, #tpu.memory_space<vmem>>, vector<1x128xf32>
      %395 = arith.addf %387, %394 : vector<1x128xf32>
      %c4_i32_209 = arith.constant 4 : i32
      %396 = arith.addi %362, %c4_i32_209 : i32
      %397 = arith.index_cast %396 : i32 to index
      %398 = memref.load %arg2[%397] : memref<64xi32, #tpu.memory_space<smem>>
      %c0_i32_210 = arith.constant 0 : i32
      %c127_i32_211 = arith.constant 127 : i32
      %399 = arith.maxsi %c0_i32_210, %398 : i32
      %400 = arith.minsi %c127_i32_211, %399 : i32
      %401 = arith.index_cast %400 : i32 to index
      %c0_212 = arith.constant 0 : index
      %402 = vector.load %arg3[%401, %c0_212] : memref<128x128xf32, #tpu.memory_space<vmem>>, vector<1x128xf32>
      %403 = arith.addf %395, %402 : vector<1x128xf32>
      %c5_i32_213 = arith.constant 5 : i32
      %404 = arith.addi %362, %c5_i32_213 : i32
      %405 = arith.index_cast %404 : i32 to index
      %406 = memref.load %arg2[%405] : memref<64xi32, #tpu.memory_space<smem>>
      %c0_i32_214 = arith.constant 0 : i32
      %c127_i32_215 = arith.constant 127 : i32
      %407 = arith.maxsi %c0_i32_214, %406 : i32
      %408 = arith.minsi %c127_i32_215, %407 : i32
      %409 = arith.index_cast %408 : i32 to index
      %c0_216 = arith.constant 0 : index
      %410 = vector.load %arg3[%409, %c0_216] : memref<128x128xf32, #tpu.memory_space<vmem>>, vector<1x128xf32>
      %411 = arith.addf %403, %410 : vector<1x128xf32>
      %c6_i32_217 = arith.constant 6 : i32
      %412 = arith.addi %362, %c6_i32_217 : i32
      %413 = arith.index_cast %412 : i32 to index
      %414 = memref.load %arg2[%413] : memref<64xi32, #tpu.memory_space<smem>>
      %c0_i32_218 = arith.constant 0 : i32
      %c127_i32_219 = arith.constant 127 : i32
      %415 = arith.maxsi %c0_i32_218, %414 : i32
      %416 = arith.minsi %c127_i32_219, %415 : i32
      %417 = arith.index_cast %416 : i32 to index
      %c0_220 = arith.constant 0 : index
      %418 = vector.load %arg3[%417, %c0_220] : memref<128x128xf32, #tpu.memory_space<vmem>>, vector<1x128xf32>
      %419 = arith.addf %411, %418 : vector<1x128xf32>
      %c7_i32_221 = arith.constant 7 : i32
      %420 = arith.addi %362, %c7_i32_221 : i32
      %421 = arith.index_cast %420 : i32 to index
      %422 = memref.load %arg2[%421] : memref<64xi32, #tpu.memory_space<smem>>
      %c0_i32_222 = arith.constant 0 : i32
      %c127_i32_223 = arith.constant 127 : i32
      %423 = arith.maxsi %c0_i32_222, %422 : i32
      %424 = arith.minsi %c127_i32_223, %423 : i32
      %425 = arith.index_cast %424 : i32 to index
      %c0_224 = arith.constant 0 : index
      %426 = vector.load %arg3[%425, %c0_224] : memref<128x128xf32, #tpu.memory_space<vmem>>, vector<1x128xf32>
      %427 = arith.addf %419, %426 : vector<1x128xf32>
      %c8_i32_225 = arith.constant 8 : i32
      %428 = arith.index_cast %c5_i32_189 : i32 to index
      %c0_226 = arith.constant 0 : index
      %429 = vector.load %arg7[%428, %c0_226] : memref<8x128xf32, #tpu.memory_space<vmem>>, vector<1x128xf32>
      tpu.vector_store %arg7[%428, %c0_226], %427 {strides = array<i32>} : memref<8x128xf32, #tpu.memory_space<vmem>>, vector<1x128xf32>,
      %c6_i32_227 = arith.constant 6 : i32
      %c8_i32_228 = arith.constant 8 : i32
      %430 = arith.muli %arg0, %c8_i32_228 : i32
      %431 = arith.addi %430, %c6_i32_227 : i32
      %c8_i32_229 = arith.constant 8 : i32
      %432 = arith.muli %431, %c8_i32_229 : i32
      %cst_230 = arith.constant 0.000000e+00 : f32
      %433 = vector.broadcast %cst_230 : f32 to vector<1x128xf32>
      %c0_i32_231 = arith.constant 0 : i32
      %434 = arith.addi %432, %c0_i32_231 : i32
      %435 = arith.index_cast %434 : i32 to index
      %436 = memref.load %arg2[%435] : memref<64xi32, #tpu.memory_space<smem>>
      %c0_i32_232 = arith.constant 0 : i32
      %c127_i32_233 = arith.constant 127 : i32
      %437 = arith.maxsi %c0_i32_232, %436 : i32
      %438 = arith.minsi %c127_i32_233, %437 : i32
      %439 = arith.index_cast %438 : i32 to index
      %c0_234 = arith.constant 0 : index
      %440 = vector.load %arg3[%439, %c0_234] : memref<128x128xf32, #tpu.memory_space<vmem>>, vector<1x128xf32>
      %441 = arith.addf %433, %440 : vector<1x128xf32>
      %c1_i32_235 = arith.constant 1 : i32
      %442 = arith.addi %432, %c1_i32_235 : i32
      %443 = arith.index_cast %442 : i32 to index
      %444 = memref.load %arg2[%443] : memref<64xi32, #tpu.memory_space<smem>>
      %c0_i32_236 = arith.constant 0 : i32
      %c127_i32_237 = arith.constant 127 : i32
      %445 = arith.maxsi %c0_i32_236, %444 : i32
      %446 = arith.minsi %c127_i32_237, %445 : i32
      %447 = arith.index_cast %446 : i32 to index
      %c0_238 = arith.constant 0 : index
      %448 = vector.load %arg3[%447, %c0_238] : memref<128x128xf32, #tpu.memory_space<vmem>>, vector<1x128xf32>
      %449 = arith.addf %441, %448 : vector<1x128xf32>
      %c2_i32_239 = arith.constant 2 : i32
      %450 = arith.addi %432, %c2_i32_239 : i32
      %451 = arith.index_cast %450 : i32 to index
      %452 = memref.load %arg2[%451] : memref<64xi32, #tpu.memory_space<smem>>
      %c0_i32_240 = arith.constant 0 : i32
      %c127_i32_241 = arith.constant 127 : i32
      %453 = arith.maxsi %c0_i32_240, %452 : i32
      %454 = arith.minsi %c127_i32_241, %453 : i32
      %455 = arith.index_cast %454 : i32 to index
      %c0_242 = arith.constant 0 : index
      %456 = vector.load %arg3[%455, %c0_242] : memref<128x128xf32, #tpu.memory_space<vmem>>, vector<1x128xf32>
      %457 = arith.addf %449, %456 : vector<1x128xf32>
      %c3_i32_243 = arith.constant 3 : i32
      %458 = arith.addi %432, %c3_i32_243 : i32
      %459 = arith.index_cast %458 : i32 to index
      %460 = memref.load %arg2[%459] : memref<64xi32, #tpu.memory_space<smem>>
      %c0_i32_244 = arith.constant 0 : i32
      %c127_i32_245 = arith.constant 127 : i32
      %461 = arith.maxsi %c0_i32_244, %460 : i32
      %462 = arith.minsi %c127_i32_245, %461 : i32
      %463 = arith.index_cast %462 : i32 to index
      %c0_246 = arith.constant 0 : index
      %464 = vector.load %arg3[%463, %c0_246] : memref<128x128xf32, #tpu.memory_space<vmem>>, vector<1x128xf32>
      %465 = arith.addf %457, %464 : vector<1x128xf32>
      %c4_i32_247 = arith.constant 4 : i32
      %466 = arith.addi %432, %c4_i32_247 : i32
      %467 = arith.index_cast %466 : i32 to index
      %468 = memref.load %arg2[%467] : memref<64xi32, #tpu.memory_space<smem>>
      %c0_i32_248 = arith.constant 0 : i32
      %c127_i32_249 = arith.constant 127 : i32
      %469 = arith.maxsi %c0_i32_248, %468 : i32
      %470 = arith.minsi %c127_i32_249, %469 : i32
      %471 = arith.index_cast %470 : i32 to index
      %c0_250 = arith.constant 0 : index
      %472 = vector.load %arg3[%471, %c0_250] : memref<128x128xf32, #tpu.memory_space<vmem>>, vector<1x128xf32>
      %473 = arith.addf %465, %472 : vector<1x128xf32>
      %c5_i32_251 = arith.constant 5 : i32
      %474 = arith.addi %432, %c5_i32_251 : i32
      %475 = arith.index_cast %474 : i32 to index
      %476 = memref.load %arg2[%475] : memref<64xi32, #tpu.memory_space<smem>>
      %c0_i32_252 = arith.constant 0 : i32
      %c127_i32_253 = arith.constant 127 : i32
      %477 = arith.maxsi %c0_i32_252, %476 : i32
      %478 = arith.minsi %c127_i32_253, %477 : i32
      %479 = arith.index_cast %478 : i32 to index
      %c0_254 = arith.constant 0 : index
      %480 = vector.load %arg3[%479, %c0_254] : memref<128x128xf32, #tpu.memory_space<vmem>>, vector<1x128xf32>
      %481 = arith.addf %473, %480 : vector<1x128xf32>
      %c6_i32_255 = arith.constant 6 : i32
      %482 = arith.addi %432, %c6_i32_255 : i32
      %483 = arith.index_cast %482 : i32 to index
      %484 = memref.load %arg2[%483] : memref<64xi32, #tpu.memory_space<smem>>
      %c0_i32_256 = arith.constant 0 : i32
      %c127_i32_257 = arith.constant 127 : i32
      %485 = arith.maxsi %c0_i32_256, %484 : i32
      %486 = arith.minsi %c127_i32_257, %485 : i32
      %487 = arith.index_cast %486 : i32 to index
      %c0_258 = arith.constant 0 : index
      %488 = vector.load %arg3[%487, %c0_258] : memref<128x128xf32, #tpu.memory_space<vmem>>, vector<1x128xf32>
      %489 = arith.addf %481, %488 : vector<1x128xf32>
      %c7_i32_259 = arith.constant 7 : i32
      %490 = arith.addi %432, %c7_i32_259 : i32
      %491 = arith.index_cast %490 : i32 to index
      %492 = memref.load %arg2[%491] : memref<64xi32, #tpu.memory_space<smem>>
      %c0_i32_260 = arith.constant 0 : i32
      %c127_i32_261 = arith.constant 127 : i32
      %493 = arith.maxsi %c0_i32_260, %492 : i32
      %494 = arith.minsi %c127_i32_261, %493 : i32
      %495 = arith.index_cast %494 : i32 to index
      %c0_262 = arith.constant 0 : index
      %496 = vector.load %arg3[%495, %c0_262] : memref<128x128xf32, #tpu.memory_space<vmem>>, vector<1x128xf32>
      %497 = arith.addf %489, %496 : vector<1x128xf32>
      %c8_i32_263 = arith.constant 8 : i32
      %498 = arith.index_cast %c6_i32_227 : i32 to index
      %c0_264 = arith.constant 0 : index
      %499 = vector.load %arg7[%498, %c0_264] : memref<8x128xf32, #tpu.memory_space<vmem>>, vector<1x128xf32>
      tpu.vector_store %arg7[%498, %c0_264], %497 {strides = array<i32>} : memref<8x128xf32, #tpu.memory_space<vmem>>, vector<1x128xf32>,
      %c7_i32_265 = arith.constant 7 : i32
      %c8_i32_266 = arith.constant 8 : i32
      %500 = arith.muli %arg0, %c8_i32_266 : i32
      %501 = arith.addi %500, %c7_i32_265 : i32
      %c8_i32_267 = arith.constant 8 : i32
      %502 = arith.muli %501, %c8_i32_267 : i32
      %cst_268 = arith.constant 0.000000e+00 : f32
      %503 = vector.broadcast %cst_268 : f32 to vector<1x128xf32>
      %c0_i32_269 = arith.constant 0 : i32
      %504 = arith.addi %502, %c0_i32_269 : i32
      %505 = arith.index_cast %504 : i32 to index
      %506 = memref.load %arg2[%505] : memref<64xi32, #tpu.memory_space<smem>>
      %c0_i32_270 = arith.constant 0 : i32
      %c127_i32_271 = arith.constant 127 : i32
      %507 = arith.maxsi %c0_i32_270, %506 : i32
      %508 = arith.minsi %c127_i32_271, %507 : i32
      %509 = arith.index_cast %508 : i32 to index
      %c0_272 = arith.constant 0 : index
      %510 = vector.load %arg3[%509, %c0_272] : memref<128x128xf32, #tpu.memory_space<vmem>>, vector<1x128xf32>
      %511 = arith.addf %503, %510 : vector<1x128xf32>
      %c1_i32_273 = arith.constant 1 : i32
      %512 = arith.addi %502, %c1_i32_273 : i32
      %513 = arith.index_cast %512 : i32 to index
      %514 = memref.load %arg2[%513] : memref<64xi32, #tpu.memory_space<smem>>
      %c0_i32_274 = arith.constant 0 : i32
      %c127_i32_275 = arith.constant 127 : i32
      %515 = arith.maxsi %c0_i32_274, %514 : i32
      %516 = arith.minsi %c127_i32_275, %515 : i32
      %517 = arith.index_cast %516 : i32 to index
      %c0_276 = arith.constant 0 : index
      %518 = vector.load %arg3[%517, %c0_276] : memref<128x128xf32, #tpu.memory_space<vmem>>, vector<1x128xf32>
      %519 = arith.addf %511, %518 : vector<1x128xf32>
      %c2_i32_277 = arith.constant 2 : i32
      %520 = arith.addi %502, %c2_i32_277 : i32
      %521 = arith.index_cast %520 : i32 to index
      %522 = memref.load %arg2[%521] : memref<64xi32, #tpu.memory_space<smem>>
      %c0_i32_278 = arith.constant 0 : i32
      %c127_i32_279 = arith.constant 127 : i32
      %523 = arith.maxsi %c0_i32_278, %522 : i32
      %524 = arith.minsi %c127_i32_279, %523 : i32
      %525 = arith.index_cast %524 : i32 to index
      %c0_280 = arith.constant 0 : index
      %526 = vector.load %arg3[%525, %c0_280] : memref<128x128xf32, #tpu.memory_space<vmem>>, vector<1x128xf32>
      %527 = arith.addf %519, %526 : vector<1x128xf32>
      %c3_i32_281 = arith.constant 3 : i32
      %528 = arith.addi %502, %c3_i32_281 : i32
      %529 = arith.index_cast %528 : i32 to index
      %530 = memref.load %arg2[%529] : memref<64xi32, #tpu.memory_space<smem>>
      %c0_i32_282 = arith.constant 0 : i32
      %c127_i32_283 = arith.constant 127 : i32
      %531 = arith.maxsi %c0_i32_282, %530 : i32
      %532 = arith.minsi %c127_i32_283, %531 : i32
      %533 = arith.index_cast %532 : i32 to index
      %c0_284 = arith.constant 0 : index
      %534 = vector.load %arg3[%533, %c0_284] : memref<128x128xf32, #tpu.memory_space<vmem>>, vector<1x128xf32>
      %535 = arith.addf %527, %534 : vector<1x128xf32>
      %c4_i32_285 = arith.constant 4 : i32
      %536 = arith.addi %502, %c4_i32_285 : i32
      %537 = arith.index_cast %536 : i32 to index
      %538 = memref.load %arg2[%537] : memref<64xi32, #tpu.memory_space<smem>>
      %c0_i32_286 = arith.constant 0 : i32
      %c127_i32_287 = arith.constant 127 : i32
      %539 = arith.maxsi %c0_i32_286, %538 : i32
      %540 = arith.minsi %c127_i32_287, %539 : i32
      %541 = arith.index_cast %540 : i32 to index
      %c0_288 = arith.constant 0 : index
      %542 = vector.load %arg3[%541, %c0_288] : memref<128x128xf32, #tpu.memory_space<vmem>>, vector<1x128xf32>
      %543 = arith.addf %535, %542 : vector<1x128xf32>
      %c5_i32_289 = arith.constant 5 : i32
      %544 = arith.addi %502, %c5_i32_289 : i32
      %545 = arith.index_cast %544 : i32 to index
      %546 = memref.load %arg2[%545] : memref<64xi32, #tpu.memory_space<smem>>
      %c0_i32_290 = arith.constant 0 : i32
      %c127_i32_291 = arith.constant 127 : i32
      %547 = arith.maxsi %c0_i32_290, %546 : i32
      %548 = arith.minsi %c127_i32_291, %547 : i32
      %549 = arith.index_cast %548 : i32 to index
      %c0_292 = arith.constant 0 : index
      %550 = vector.load %arg3[%549, %c0_292] : memref<128x128xf32, #tpu.memory_space<vmem>>, vector<1x128xf32>
      %551 = arith.addf %543, %550 : vector<1x128xf32>
      %c6_i32_293 = arith.constant 6 : i32
      %552 = arith.addi %502, %c6_i32_293 : i32
      %553 = arith.index_cast %552 : i32 to index
      %554 = memref.load %arg2[%553] : memref<64xi32, #tpu.memory_space<smem>>
      %c0_i32_294 = arith.constant 0 : i32
      %c127_i32_295 = arith.constant 127 : i32
      %555 = arith.maxsi %c0_i32_294, %554 : i32
      %556 = arith.minsi %c127_i32_295, %555 : i32
      %557 = arith.index_cast %556 : i32 to index
      %c0_296 = arith.constant 0 : index
      %558 = vector.load %arg3[%557, %c0_296] : memref<128x128xf32, #tpu.memory_space<vmem>>, vector<1x128xf32>
      %559 = arith.addf %551, %558 : vector<1x128xf32>
      %c7_i32_297 = arith.constant 7 : i32
      %560 = arith.addi %502, %c7_i32_297 : i32
      %561 = arith.index_cast %560 : i32 to index
      %562 = memref.load %arg2[%561] : memref<64xi32, #tpu.memory_space<smem>>
      %c0_i32_298 = arith.constant 0 : i32
      %c127_i32_299 = arith.constant 127 : i32
      %563 = arith.maxsi %c0_i32_298, %562 : i32
      %564 = arith.minsi %c127_i32_299, %563 : i32
      %565 = arith.index_cast %564 : i32 to index
      %c0_300 = arith.constant 0 : index
      %566 = vector.load %arg3[%565, %c0_300] : memref<128x128xf32, #tpu.memory_space<vmem>>, vector<1x128xf32>
      %567 = arith.addf %559, %566 : vector<1x128xf32>
      %c8_i32_301 = arith.constant 8 : i32
      %568 = arith.index_cast %c7_i32_265 : i32 to index
      %c0_302 = arith.constant 0 : index
      %569 = vector.load %arg7[%568, %c0_302] : memref<8x128xf32, #tpu.memory_space<vmem>>, vector<1x128xf32>
      tpu.vector_store %arg7[%568, %c0_302], %567 {strides = array<i32>} : memref<8x128xf32, #tpu.memory_space<vmem>>, vector<1x128xf32>,
      %c8_i32_303 = arith.constant 8 : i32
      %c0_304 = arith.constant 0 : index
      %c0_305 = arith.constant 0 : index
      %570 = vector.load %arg7[%c0_304, %c0_305] : memref<8x128xf32, #tpu.memory_space<vmem>>, vector<8x128xf32>
      %cst_306 = arith.constant 1.250000e-01 : f32
      %571 = vector.broadcast %cst_306 : f32 to vector<8x128xf32>
      %572 = arith.mulf %570, %571 : vector<8x128xf32>
      %573 = arith.truncf %572 : vector<8x128xf32> to vector<8x128xbf16>
      %c0_307 = arith.constant 0 : index
      %c0_308 = arith.constant 0 : index
      %574 = vector.load %arg8[%c0_307, %c0_308] : memref<8x128xbf16, #tpu.memory_space<vmem>>, vector<8x128xbf16>
      tpu.vector_store %arg8[%c0_307, %c0_308], %573 {strides = array<i32>} : memref<8x128xbf16, #tpu.memory_space<vmem>>, vector<8x128xbf16>,
    } else {
    }
    %c0 = arith.constant 0 : index
    %c0_1 = arith.constant 0 : index
    %3 = vector.load %arg8[%c0, %c0_1] : memref<8x128xbf16, #tpu.memory_space<vmem>>, vector<8x128xbf16>
    %c0_2 = arith.constant 0 : index
    %c0_3 = arith.constant 0 : index
    %4 = vector.load %arg4[%c0_2, %c0_3] : memref<128x128xbf16, #tpu.memory_space<vmem>>, vector<128x128xbf16>
    %cst = arith.constant dense<0.000000e+00> : vector<8x128xf32>
    %5 = tpu.matmul %3, %4, %cst {dimension_numbers = #tpu.dot_dimension_numbers<[1], [0], [0], [1], [0, 0, 1, 1], [], []>} : vector<8x128xbf16>, vector<128x128xbf16>, vector<8x128xf32> -> vector<8x128xf32>
    %c0_4 = arith.constant 0 : index
    %c0_5 = arith.constant 0 : index
    %6 = vector.load %arg5[%c0_4, %c0_5] : memref<1x128xf32, #tpu.memory_space<vmem>>, vector<1x128xf32>
    %7 = vector.broadcast %6 : vector<1x128xf32> to vector<8x128xf32>
    %8 = arith.addf %5, %7 : vector<8x128xf32>
    %c0_6 = arith.constant 0 : index
    %c0_7 = arith.constant 0 : index
    %9 = vector.load %arg6[%c0_6, %c0_7] : memref<8x128xf32, #tpu.memory_space<vmem>>, vector<8x128xf32>
    tpu.vector_store %arg6[%c0_6, %c0_7], %8 {strides = array<i32>} : memref<8x128xf32, #tpu.memory_space<vmem>>, vector<8x128xf32>,
    return
  }
  func.func @transform_0(%arg0: i32, %arg1: i32, %arg2: memref<64xi32, #tpu.memory_space<smem>>) -> (i32, i32) {
    %c0_i32 = arith.constant 0 : i32
    %c0_i32_0 = arith.constant 0 : i32
    %c0_i32_1 = arith.constant 0 : i32
    return %c0_i32, %c0_i32_0 : i32, i32
  }
  func.func @transform_1(%arg0: i32, %arg1: i32, %arg2: memref<64xi32, #tpu.memory_space<smem>>) -> (i32, i32) {
    %c0_i32 = arith.constant 0 : i32
    %c0_i32_0 = arith.constant 0 : i32
    return %c0_i32, %arg1 : i32, i32
  }
  func.func @transform_2(%arg0: i32, %arg1: i32, %arg2: memref<64xi32, #tpu.memory_space<smem>>) -> (i32, i32) {
    %c0_i32 = arith.constant 0 : i32
    %c0_i32_0 = arith.constant 0 : i32
    return %c0_i32, %arg1 : i32, i32
  }
  func.func @transform_3(%arg0: i32, %arg1: i32, %arg2: memref<64xi32, #tpu.memory_space<smem>>) -> (i32, i32) {
    %c0_i32 = arith.constant 0 : i32
    return %arg0, %arg1 : i32, i32
  }
}

</mosaic_0001>

<bundles_post_ra>
// kernel: tpu_custom_call.1
= control target key start
LH: loop header
LB: loop body
LE: loop exit
PB: predicated region body
PF: predicated region fallthrough
CT: control target
= control target key end

     0   :  { %s1473_s18 = smov [#allocation5]   ;;  %s1666_s0 = inlined_call_operand.hbm [shape: s32[64], index: 0, kind: input, shape index: {}]   ;;  %s1667_s1 = inlined_call_operand.hbm [shape: f32[128,128], index: 1, kind: input, shape index: {}]   ;;  %s1668_s2 = inlined_call_operand.hbm [shape: bf16[128,128], index: 2, kind: input, shape index: {}]   ;;  %s1669_s3 = inlined_call_operand.vmem [shape: f32[1,128], index: 3, kind: input, shape index: {}]   ;;  %s1670_s4 = inlined_call_operand.hbm [shape: f32[8,128], index: 4, kind: output, shape index: {}]  }
   0x1   :  { %s10_s17 = sshll.u32 %s1666_s0, 4  ;;  %s11_s17 = int_to_ptr.hbm [resolvable:$true] %s10_s17 }
   0x2   :  { %13 = dma.hbm_to_smem %s11_s17, 16, %s1473_s18, [#allocation4] }
   0x3   :  { %1465 = dma.done.wait [#allocation4], 16 }
   0x4   :  { %1466 = vsyncadd [#allocation4], 4294967280 }
   0x5   :  { %16 = sfence }
   0x6   :  { %17 = vsyncpa [#allocation7], 0 }
   0x7   :  { %18 = vsyncpa [#allocation10], 0 }
   0x8   :  { %19 = vsyncpa [#allocation8], 0  ;;  %s24_s21 = sshll.u32 %s1667_s1, 4  ;;  %s1474_s22 = smov [#allocation6]   ;;  %s25_s21 = int_to_ptr.hbm [resolvable:$true] %s24_s21 }
   0x9   :  { %s26_s23 = sshll.u32 %s1474_s22, 4  ;;  %s37_s0 = sshll.u32 %s1668_s2, 4  ;;  %s27_s23 = int_to_ptr.vmem [resolvable:$true] %s26_s23  ;;  %s38_s0 = int_to_ptr.hbm [resolvable:$true] %s37_s0 }
   0xa   :  { %s1475_s26 = smov 128   ;;  %s1476_s27 = smov 8  }
   0xb   :  { %32 = dma.hbm_to_vmem [thread:$0]  %s25_s21, 2048, %s27_s23, [#allocation7], %s1475_s26, %s1475_s26, %s1476_s27  }
   0xc   :  { %s1477_s28 = smov [#allocation9]   ;;  %s1478_s30 = smov 64  }
   0xd   :  { %s39_s29 = sshll.u32 %s1477_s28, 4  ;;  %s1479_s5 = smov 4   ;;  %s40_s29 = int_to_ptr.vmem [resolvable:$true] %s39_s29 }
   0xe   :  { %45 = dma.hbm_to_vmem [thread:$0]  %s38_s0, 1024, %s40_s29, [#allocation10], %s1478_s30, %s1478_s30, %s1479_s5  }
   0xf   :  { %1467 = dma.done.wait [#allocation7], 2048  }
  0x10   :  { %1468 = vsyncadd [#allocation7], 4294965248 }
  0x11   :  { %1469 = dma.done.wait [#allocation10], 1024  }
  0x12   :  { %1470 = vsyncadd [#allocation10], 4294966272  ;;  %s61_s1 = sld [smem:[#allocation5]]  ;;  %v1371_v0 = vld [vmem:[#allocation9 + $0x38] sm:$0xff]  ;;  %v1370_v1 = vld [vmem:[#allocation9 + $0x30] sm:$0xff] }
  0x13   :  { %s826_s6 = sld [smem:[#allocation5 + $0x1]]  ;;  %725 = vmatpush.bf16.msra.mxu0 %v1371_v0  ;;  %v1369_v2 = vld [vmem:[#allocation9 + $0x28] sm:$0xff]  ;;  %v1368_v3 = vld [vmem:[#allocation9 + $0x20] sm:$0xff]  ;;  %v1367_v7 = vld [vmem:[#allocation9 + $0x18] sm:$0xff] }
  0x14   :  { %s832_s7 = sld [smem:[#allocation5 + $0x2]]  ;;  %v1366_v10 = vld [vmem:[#allocation9 + $0x10] sm:$0xff]  ;;  %v1365_v13 = vld [vmem:[#allocation9 + $0x8] sm:$0xff]  ;;  %v1364_v16 = vld [vmem:[#allocation9] sm:$0xff] }
  0x15   :  { %s1515_s8 = sld [smem:[#allocation5 + $0x3]] }
  0x16   :  { %s1517_s2 = sld [smem:[#allocation5 + $0x4]] }
  0x17   :  { %s1519_s9 = sld [smem:[#allocation5 + $0x5]]  ;;  %726 = vmatpush.bf16.msra.mxu0 %v1370_v1 }
  0x18   :  { %p62_p0 = scmp.gt.s32.totalorder %s61_s1, 0  ;;  %p821_p1 = scmp.lt.s32.totalorder %s61_s1, 127 }
  0x19   :  { %p71_p2 = scmp.gt.s32.totalorder %s826_s6, 0  ;;  %p827_p3 = scmp.lt.s32.totalorder %s826_s6, 127 }
  0x1a   :  { %s1672_s1 = smov (!%p62_p0, %s61_s1), 0  ;;  %p80_p4 = scmp.gt.s32.totalorder %s832_s7, 0 }
  0x1b   :  { %s1674_s6 = smov (!%p71_p2, %s826_s6), 0  ;;  %s1676_s1 = smov (!%p821_p1, %s1672_s1), 127  ;;  %727 = vmatpush.bf16.msra.mxu0 %v1369_v2 }
  0x1c   :  { %s1678_s6 = smov (!%p827_p3, %s1674_s6), 127  ;;  %p833_p5 = scmp.lt.s32.totalorder %s832_s7, 127 }
  0x1d   :  { %s1680_s7 = smov (!%p80_p4, %s832_s7), 0  ;;  %p89_p6 = scmp.gt.s32.totalorder %s1515_s8, 0 }
  0x1e   :  { %p839_p7 = scmp.lt.s32.totalorder %s1515_s8, 127  ;;  %s66_s10 = scalar_lea.vmem [#allocation6], %s1676_s1 }
  0x1f   :  { %v67_v4 = vld [vmem:[%s66_s10] sm:$0x1]  ;;  %s75_s11 = scalar_lea.vmem [#allocation6], %s1678_s6  ;;  %s1682_s7 = smov (!%p833_p5, %s1680_s7), 127  ;;  %728 = vmatpush.bf16.msra.mxu0 %v1368_v3 }
  0x20   :  { %v76_v5 = vld [vmem:[%s75_s11] sm:$0x1]  ;;  %s1684_s8 = smov (!%p89_p6, %s1515_s8), 0  ;;  %p98_p8 = scmp.gt.s32.totalorder %s1517_s2, 0 }
  0x21   :  { %v77_v6 = vadd.f32 %v76_v5, %v67_v4  ;;  %s1686_s8 = smov (!%p839_p7, %s1684_s8), 127  ;;  %s84_s12 = scalar_lea.vmem [#allocation6], %s1682_s7 }
  0x22   :  { %v85_v8 = vld [vmem:[%s84_s12] sm:$0x1]  ;;  %s99_s13 = scalar_select %p98_p8, %s1517_s2, 0 }
  0x23   :  { %p845_p9 = scmp.lt.s32.totalorder %s1517_s2, 127  ;;  %p107_p10 = scmp.gt.s32.totalorder %s1519_s9, 0  ;;  %v86_v9 = vadd.f32 %v85_v8, %v77_v6  ;;  %729 = vmatpush.bf16.msra.mxu0 %v1367_v7 }
  0x24   :  { %p851_p11 = scmp.lt.s32.totalorder %s1519_s9, 127  ;;  %s93_s14 = scalar_lea.vmem [#allocation6], %s1686_s8 }
  0x25   :  { %s1688_s13 = smov (!%p845_p9, %s99_s13), 127  ;;  %v94_v11 = vld [vmem:[%s93_s14] sm:$0x1]  ;;  %s1690_s9 = smov (!%p107_p10, %s1519_s9), 0 }
  0x26   :  { %s856_s15 = sld [smem:[#allocation5 + $0x6]]  ;;  %s1692_s9 = smov (!%p851_p11, %s1690_s9), 127  ;;  %v95_v12 = vadd.f32 %v94_v11, %v86_v9 }
  0x27   :  { %s862_s16 = sld [smem:[#allocation5 + $0x7]]  ;;  %730 = vmatpush.bf16.msra.mxu0 %v1366_v10  ;;  %s102_s17 = scalar_lea.vmem [#allocation6], %s1688_s13 }
  0x28   :  { %v103_v14 = vld [vmem:[%s102_s17] sm:$0x1]  ;;  %s1530_s18 = sld [smem:[#allocation5 + $0x8]]  ;;  %s111_s21 = scalar_lea.vmem [#allocation6], %s1692_s9 }
  0x29   :  { %s1532_s19 = sld [smem:[#allocation5 + $0x9]]  ;;  %v104_v15 = vadd.f32 %v103_v14, %v95_v12  ;;  %v112_v17 = vld [vmem:[%s111_s21] sm:$0x1] }
  0x2a   :  { %s1534_s20 = sld [smem:[#allocation5 + $0xa]] }
  0x2b   :  { %731 = vmatpush.bf16.msra.mxu0 %v1365_v13  ;;  %s1536_s22 = sld [smem:[#allocation5 + $0xb]]  ;;  %v113_v18 = vadd.f32 %v112_v17, %v104_v15 }
  0x2c   :  { %p116_p12 = scmp.gt.s32.totalorder %s856_s15, 0  ;;  %p857_p13 = scmp.lt.s32.totalorder %s856_s15, 127 }
  0x2d   :  { %p125_p0 = scmp.gt.s32.totalorder %s862_s16, 0  ;;  %p863_p1 = scmp.lt.s32.totalorder %s862_s16, 127 }
  0x2e   :  { %s1694_s15 = smov (!%p116_p12, %s856_s15), 0  ;;  %p137_p2 = scmp.gt.s32.totalorder %s1530_s18, 0 }
  0x2f   :  { %s1696_s15 = smov (!%p857_p13, %s1694_s15), 127  ;;  %732 = vmatpush.bf16.msra.mxu0 %v1364_v16  ;;  %s1698_s16 = smov (!%p125_p0, %s862_s16), 0 }
  0x30   :  { %s120_s23 = scalar_lea.vmem [#allocation6], %s1696_s15  ;;  %s1700_s16 = smov (!%p863_p1, %s1698_s16), 127 }
  0x31   :  { %v121_v19 = vld [vmem:[%s120_s23] sm:$0x1]  ;;  %s138_s24 = scalar_select %p137_p2, %s1530_s18, 0 }
  0x32   :  { %v122_v20 = vadd.f32 %v121_v19, %v113_v18  ;;  %p869_p3 = scmp.lt.s32.totalorder %s1530_s18, 127  ;;  %s129_s25 = scalar_lea.vmem [#allocation6], %s1700_s16 }
  0x33   :  { %v130_v21 = vld [vmem:[%s129_s25] sm:$0x1]  ;;  %p146_p4 = scmp.gt.s32.totalorder %s1532_s19, 0  ;;  %p875_p5 = scmp.lt.s32.totalorder %s1532_s19, 127 }
  0x34   :  { %v131_v22 = vadd.f32 %v130_v21, %v122_v20  ;;  %s1702_s24 = smov (!%p869_p3, %s138_s24), 127  ;;  %p155_p6 = scmp.gt.s32.totalorder %s1534_s20, 0 }
  0x35   :  { %s1704_s19 = smov (!%p146_p4, %s1532_s19), 0  ;;  %p881_p7 = scmp.lt.s32.totalorder %s1534_s20, 127 }
  0x36   :  { %132 = vst [vmem:[#allocation2] sm:$0x1] %v131_v22  ;;  %s1706_s19 = smov (!%p875_p5, %s1704_s19), 127  ;;  %p164_p8 = scmp.gt.s32.totalorder %s1536_s22, 0 }
  0x37   :  { %s156_s0 = scalar_select %p155_p6, %s1534_s20, 0 }
  0x38   :  { %p887_p9 = scmp.lt.s32.totalorder %s1536_s22, 127  ;;  %s141_s26 = scalar_lea.vmem [#allocation6], %s1702_s24 }
  0x39   :  { %s1708_s0 = smov (!%p881_p7, %s156_s0), 127  ;;  %v142_v23 = vld [vmem:[%s141_s26] sm:$0x1]  ;;  %s150_s27 = scalar_lea.vmem [#allocation6], %s1706_s19 }
  0x3a   :  { %v151_v24 = vld [vmem:[%s150_s27] sm:$0x1]  ;;  %s1710_s22 = smov (!%p164_p8, %s1536_s22), 0  ;;  %s892_s28 = sld [smem:[#allocation5 + $0xc]] }
  0x3b   :  { %s1712_s22 = smov (!%p887_p9, %s1710_s22), 127  ;;  %v152_v25 = vadd.f32 %v151_v24, %v142_v23  ;;  %s898_s29 = sld [smem:[#allocation5 + $0xd]] }
  0x3c   :  { %s159_s30 = scalar_lea.vmem [#allocation6], %s1708_s0  ;;  %s904_s5 = sld [smem:[#allocation5 + $0xe]] }
  0x3d   :  { %v160_v26 = vld [vmem:[%s159_s30] sm:$0x1]  ;;  %s1550_s1 = sld [smem:[#allocation5 + $0xf]]  ;;  %s168_s7 = scalar_lea.vmem [#allocation6], %s1712_s22 }
  0x3e   :  { %s1552_s6 = sld [smem:[#allocation5 + $0x10]]  ;;  %v161_v27 = vadd.f32 %v160_v26, %v152_v25  ;;  %v169_v28 = vld [vmem:[%s168_s7] sm:$0x1] }
  0x3f   :  { %s1554_s8 = sld [smem:[#allocation5 + $0x11]] }
  0x40   :  { %p173_p10 = scmp.gt.s32.totalorder %s892_s28, 0  ;;  %p893_p11 = scmp.lt.s32.totalorder %s892_s28, 127  ;;  %v170_v29 = vadd.f32 %v169_v28, %v161_v27 }
  0x41   :  { %p182_p12 = scmp.gt.s32.totalorder %s898_s29, 0  ;;  %p899_p13 = scmp.lt.s32.totalorder %s898_s29, 127 }
  0x42   :  { %s1714_s28 = smov (!%p173_p10, %s892_s28), 0  ;;  %p191_p0 = scmp.gt.s32.totalorder %s904_s5, 0 }
  0x43   :  { %s1716_s28 = smov (!%p893_p11, %s1714_s28), 127  ;;  %s1718_s29 = smov (!%p182_p12, %s898_s29), 0 }
  0x44   :  { %s177_s2 = scalar_lea.vmem [#allocation6], %s1716_s28  ;;  %s1720_s29 = smov (!%p899_p13, %s1718_s29), 127 }
  0x45   :  { %v178_v30 = vld [vmem:[%s177_s2] sm:$0x1]  ;;  %s192_s9 = scalar_select %p191_p0, %s904_s5, 0 }
  0x46   :  { %v179_v31 = vadd.f32 %v178_v30, %v170_v29  ;;  %p905_p1 = scmp.lt.s32.totalorder %s904_s5, 127  ;;  %s186_s10 = scalar_lea.vmem [#allocation6], %s1720_s29 }
  0x47   :  { %v187_v32 = vld [vmem:[%s186_s10] sm:$0x1]  ;;  %p200_p2 = scmp.gt.s32.totalorder %s1550_s1, 0  ;;  %p911_p3 = scmp.lt.s32.totalorder %s1550_s1, 127 }
  0x48   :  { %v188_v33 = vadd.f32 %v187_v32, %v179_v31  ;;  %s1722_s9 = smov (!%p905_p1, %s192_s9), 127  ;;  %p211_p4 = scmp.gt.s32.totalorder %s1552_s6, 0 }
  0x49   :  { %s1724_s1 = smov (!%p200_p2, %s1550_s1), 0  ;;  %s195_s11 = scalar_lea.vmem [#allocation6], %s1722_s9 }
  0x4a   :  { %v196_v34 = vld [vmem:[%s195_s11] sm:$0x1]  ;;  %s1726_s1 = smov (!%p911_p3, %s1724_s1), 127  ;;  %p917_p5 = scmp.lt.s32.totalorder %s1552_s6, 127 }
  0x4b   :  { %v197_v35 = vadd.f32 %v196_v34, %v188_v33  ;;  %s212_s12 = scalar_select %p211_p4, %s1552_s6, 0 }
  0x4c   :  { %s204_s13 = scalar_lea.vmem [#allocation6], %s1726_s1  ;;  %p220_p6 = scmp.gt.s32.totalorder %s1554_s8, 0 }
  0x4d   :  { %v205_v36 = vld [vmem:[%s204_s13] sm:$0x1]  ;;  %p923_p7 = scmp.lt.s32.totalorder %s1554_s8, 127  ;;  %s1728_s12 = smov (!%p917_p5, %s212_s12), 127 }
  0x4e   :  { %v206_v37 = vadd.f32 %v205_v36, %v197_v35  ;;  %s1730_s8 = smov (!%p220_p6, %s1554_s8), 0  ;;  %s928_s14 = sld [smem:[#allocation5 + $0x12]] }
  0x4f   :  { %s1732_s8 = smov (!%p923_p7, %s1730_s8), 127  ;;  %s934_s15 = sld [smem:[#allocation5 + $0x13]] }
  0x50   :  { %207 = vst [vmem:[#allocation2 + $0x1] sm:$0x1] %v206_v37  ;;  %s940_s16 = sld [smem:[#allocation5 + $0x14]]  ;;  %s215_s19 = scalar_lea.vmem [#allocation6], %s1728_s12 }
  0x51   :  { %s1565_s17 = sld [smem:[#allocation5 + $0x15]]  ;;  %v216_v38 = vld [vmem:[%s215_s19] sm:$0x1]  ;;  %s224_s20 = scalar_lea.vmem [#allocation6], %s1732_s8 }
  0x52   :  { %s1567_s18 = sld [smem:[#allocation5 + $0x16]]  ;;  %v225_v39 = vld [vmem:[%s224_s20] sm:$0x1] }
  0x53   :  { %s1569_s21 = sld [smem:[#allocation5 + $0x17]]  ;;  %v226_v40 = vadd.f32 %v225_v39, %v216_v38 }
  0x54   :  { %p229_p8 = scmp.gt.s32.totalorder %s928_s14, 0  ;;  %p929_p9 = scmp.lt.s32.totalorder %s928_s14, 127 }
  0x55   :  { %p238_p10 = scmp.gt.s32.totalorder %s934_s15, 0  ;;  %p935_p11 = scmp.lt.s32.totalorder %s934_s15, 127 }
  0x56   :  { %s1734_s14 = smov (!%p229_p8, %s928_s14), 0  ;;  %p247_p12 = scmp.gt.s32.totalorder %s940_s16, 0 }
  0x57   :  { %s1736_s14 = smov (!%p929_p9, %s1734_s14), 127  ;;  %s1738_s15 = smov (!%p238_p10, %s934_s15), 0 }
  0x58   :  { %s233_s22 = scalar_lea.vmem [#allocation6], %s1736_s14  ;;  %s1740_s15 = smov (!%p935_p11, %s1738_s15), 127 }
  0x59   :  { %v234_v41 = vld [vmem:[%s233_s22] sm:$0x1]  ;;  %s248_s23 = scalar_select %p247_p12, %s940_s16, 0 }
  0x5a   :  { %v235_v42 = vadd.f32 %v234_v41, %v226_v40  ;;  %p941_p13 = scmp.lt.s32.totalorder %s940_s16, 127  ;;  %s242_s24 = scalar_lea.vmem [#allocation6], %s1740_s15 }
  0x5b   :  { %v243_v43 = vld [vmem:[%s242_s24] sm:$0x1]  ;;  %p256_p0 = scmp.gt.s32.totalorder %s1565_s17, 0  ;;  %p947_p1 = scmp.lt.s32.totalorder %s1565_s17, 127 }
  0x5c   :  { %v244_v44 = vadd.f32 %v243_v43, %v235_v42  ;;  %s1742_s23 = smov (!%p941_p13, %s248_s23), 127  ;;  %p265_p2 = scmp.gt.s32.totalorder %s1567_s18, 0 }
  0x5d   :  { %s1744_s17 = smov (!%p256_p0, %s1565_s17), 0  ;;  %s251_s25 = scalar_lea.vmem [#allocation6], %s1742_s23 }
  0x5e   :  { %v252_v45 = vld [vmem:[%s251_s25] sm:$0x1]  ;;  %s1746_s17 = smov (!%p947_p1, %s1744_s17), 127  ;;  %p953_p3 = scmp.lt.s32.totalorder %s1567_s18, 127 }
  0x5f   :  { %v253_v46 = vadd.f32 %v252_v45, %v244_v44  ;;  %s266_s0 = scalar_select %p265_p2, %s1567_s18, 0 }
  0x60   :  { %s260_s26 = scalar_lea.vmem [#allocation6], %s1746_s17  ;;  %p274_p4 = scmp.gt.s32.totalorder %s1569_s21, 0 }
  0x61   :  { %v261_v47 = vld [vmem:[%s260_s26] sm:$0x1]  ;;  %p959_p5 = scmp.lt.s32.totalorder %s1569_s21, 127  ;;  %s1748_s0 = smov (!%p953_p3, %s266_s0), 127 }
  0x62   :  { %v262_v48 = vadd.f32 %v261_v47, %v253_v46  ;;  %s1750_s21 = smov (!%p274_p4, %s1569_s21), 0  ;;  %s964_s27 = sld [smem:[#allocation5 + $0x18]] }
  0x63   :  { %s269_s28 = scalar_lea.vmem [#allocation6], %s1748_s0  ;;  %s1752_s21 = smov (!%p959_p5, %s1750_s21), 127 }
  0x64   :  { %v270_v49 = vld [vmem:[%s269_s28] sm:$0x1]  ;;  %s970_s29 = sld [smem:[#allocation5 + $0x19]]  ;;  %s278_s5 = scalar_lea.vmem [#allocation6], %s1752_s21 }
  0x65   :  { %v271_v50 = vadd.f32 %v270_v49, %v262_v48  ;;  %s976_s30 = sld [smem:[#allocation5 + $0x1a]]  ;;  %v279_v51 = vld [vmem:[%s278_s5] sm:$0x1] }
  0x66   :  { %s982_s1 = sld [smem:[#allocation5 + $0x1b]] }
  0x67   :  { %v280_v52 = vadd.f32 %v279_v51, %v271_v50  ;;  %s1580_s6 = sld [smem:[#allocation5 + $0x1c]] }
  0x68   :  { %p285_p6 = scmp.gt.s32.totalorder %s964_s27, 0  ;;  %p965_p7 = scmp.lt.s32.totalorder %s964_s27, 127 }
  0x69   :  { %281 = vst [vmem:[#allocation2 + $0x2] sm:$0x1] %v280_v52  ;;  %s1582_s7 = sld [smem:[#allocation5 + $0x1d]] }
  0x6a   :  { %s1754_s27 = smov (!%p285_p6, %s964_s27), 0  ;;  %p294_p8 = scmp.gt.s32.totalorder %s970_s29, 0 }
  0x6b   :  { %p971_p9 = scmp.lt.s32.totalorder %s970_s29, 127  ;;  %s1756_s27 = smov (!%p965_p7, %s1754_s27), 127 }
  0x6c   :  { %s1758_s29 = smov (!%p294_p8, %s970_s29), 0  ;;  %p303_p10 = scmp.gt.s32.totalorder %s976_s30, 0 }
  0x6d   :  { %s1760_s29 = smov (!%p971_p9, %s1758_s29), 127  ;;  %p977_p11 = scmp.lt.s32.totalorder %s976_s30, 127 }
  0x6e   :  { %s304_s8 = scalar_select %p303_p10, %s976_s30, 0 }
  0x6f   :  { %p312_p12 = scmp.gt.s32.totalorder %s982_s1, 0  ;;  %p983_p13 = scmp.lt.s32.totalorder %s982_s1, 127 }
  0x70   :  { %s289_s2 = scalar_lea.vmem [#allocation6], %s1756_s27  ;;  %s298_s9 = scalar_lea.vmem [#allocation6], %s1760_s29 }
  0x71   :  { %v290_v53 = vld [vmem:[%s289_s2] sm:$0x1]  ;;  %s1762_s8 = smov (!%p977_p11, %s304_s8), 127  ;;  %s1764_s1 = smov (!%p312_p12, %s982_s1), 0 }
  0x72   :  { %v299_v54 = vld [vmem:[%s298_s9] sm:$0x1]  ;;  %p321_p0 = scmp.gt.s32.totalorder %s1580_s6, 0  ;;  %s1766_s1 = smov (!%p983_p13, %s1764_s1), 127 }
  0x73   :  { %v300_v55 = vadd.f32 %v299_v54, %v290_v53  ;;  %s307_s10 = scalar_lea.vmem [#allocation6], %s1762_s8  ;;  %p989_p1 = scmp.lt.s32.totalorder %s1580_s6, 127 }
  0x74   :  { %v308_v56 = vld [vmem:[%s307_s10] sm:$0x1]  ;;  %s322_s11 = scalar_select %p321_p0, %s1580_s6, 0 }
  0x75   :  { %p330_p2 = scmp.gt.s32.totalorder %s1582_s7, 0  ;;  %p995_p3 = scmp.lt.s32.totalorder %s1582_s7, 127  ;;  %v309_v57 = vadd.f32 %v308_v56, %v300_v55 }
  0x76   :  { %s1768_s11 = smov (!%p989_p1, %s322_s11), 127  ;;  %s316_s12 = scalar_lea.vmem [#allocation6], %s1766_s1 }
  0x77   :  { %v317_v58 = vld [vmem:[%s316_s12] sm:$0x1]  ;;  %s1770_s7 = smov (!%p330_p2, %s1582_s7), 0  ;;  %s1000_s13 = sld [smem:[#allocation5 + $0x1e]] }
  0x78   :  { %s1772_s7 = smov (!%p995_p3, %s1770_s7), 127  ;;  %v318_v59 = vadd.f32 %v317_v58, %v309_v57  ;;  %s1006_s14 = sld [smem:[#allocation5 + $0x1f]] }
  0x79   :  { %s325_s15 = scalar_lea.vmem [#allocation6], %s1768_s11  ;;  %s1012_s16 = sld [smem:[#allocation5 + $0x20]] }
  0x7a   :  { %v326_v60 = vld [vmem:[%s325_s15] sm:$0x1]  ;;  %s1590_s17 = sld [smem:[#allocation5 + $0x21]]  ;;  %s334_s19 = scalar_lea.vmem [#allocation6], %s1772_s7 }
  0x7b   :  { %s1592_s18 = sld [smem:[#allocation5 + $0x22]]  ;;  %v327_v61 = vadd.f32 %v326_v60, %v318_v59  ;;  %v335_v62 = vld [vmem:[%s334_s19] sm:$0x1] }
  0x7c   :  { %s1594_s20 = sld [smem:[#allocation5 + $0x23]] }
  0x7d   :  { %p339_p4 = scmp.gt.s32.totalorder %s1000_s13, 0  ;;  %p1001_p5 = scmp.lt.s32.totalorder %s1000_s13, 127  ;;  %v336_v63 = vadd.f32 %v335_v62, %v327_v61 }
  0x7e   :  { %p348_p6 = scmp.gt.s32.totalorder %s1006_s14, 0  ;;  %p1007_p7 = scmp.lt.s32.totalorder %s1006_s14, 127 }
  0x7f   :  { %s1774_s13 = smov (!%p339_p4, %s1000_s13), 0  ;;  %p359_p8 = scmp.gt.s32.totalorder %s1012_s16, 0 }
  0x80   :  { %s1776_s13 = smov (!%p1001_p5, %s1774_s13), 127  ;;  %s1778_s14 = smov (!%p348_p6, %s1006_s14), 0 }
  0x81   :  { %s343_s21 = scalar_lea.vmem [#allocation6], %s1776_s13  ;;  %s1780_s14 = smov (!%p1007_p7, %s1778_s14), 127 }
  0x82   :  { %v344_v0 = vld [vmem:[%s343_s21] sm:$0x1]  ;;  %s360_s22 = scalar_select %p359_p8, %s1012_s16, 0 }
  0x83   :  { %v345_v1 = vadd.f32 %v344_v0, %v336_v63  ;;  %p1013_p9 = scmp.lt.s32.totalorder %s1012_s16, 127  ;;  %s352_s23 = scalar_lea.vmem [#allocation6], %s1780_s14 }
  0x84   :  { %v353_v2 = vld [vmem:[%s352_s23] sm:$0x1]  ;;  %p368_p10 = scmp.gt.s32.totalorder %s1590_s17, 0  ;;  %p1019_p11 = scmp.lt.s32.totalorder %s1590_s17, 127 }
  0x85   :  { %v354_v3 = vadd.f32 %v353_v2, %v345_v1  ;;  %s1782_s22 = smov (!%p1013_p9, %s360_s22), 127  ;;  %p377_p12 = scmp.gt.s32.totalorder %s1592_s18, 0 }
  0x86   :  { %s1784_s17 = smov (!%p368_p10, %s1590_s17), 0  ;;  %p1025_p13 = scmp.lt.s32.totalorder %s1592_s18, 127 }
  0x87   :  { %355 = vst [vmem:[#allocation2 + $0x3] sm:$0x1] %v354_v3  ;;  %s1786_s17 = smov (!%p1019_p11, %s1784_s17), 127  ;;  %p386_p0 = scmp.gt.s32.totalorder %s1594_s20, 0 }
  0x88   :  { %s378_s24 = scalar_select %p377_p12, %s1592_s18, 0 }
  0x89   :  { %p1031_p1 = scmp.lt.s32.totalorder %s1594_s20, 127  ;;  %s363_s25 = scalar_lea.vmem [#allocation6], %s1782_s22 }
  0x8a   :  { %s1788_s24 = smov (!%p1025_p13, %s378_s24), 127  ;;  %v364_v4 = vld [vmem:[%s363_s25] sm:$0x1]  ;;  %s372_s0 = scalar_lea.vmem [#allocation6], %s1786_s17 }
  0x8b   :  { %v373_v5 = vld [vmem:[%s372_s0] sm:$0x1]  ;;  %s1790_s20 = smov (!%p386_p0, %s1594_s20), 0  ;;  %s1036_s26 = sld [smem:[#allocation5 + $0x24]] }
  0x8c   :  { %s1792_s20 = smov (!%p1031_p1, %s1790_s20), 127  ;;  %v374_v6 = vadd.f32 %v373_v5, %v364_v4  ;;  %s1042_s27 = sld [smem:[#allocation5 + $0x25]]  ;;  %v1380_v4 = vld [vmem:[%s1669_s3] ss:$0 sm:$0xff] }
  0x8d   :  { %s381_s28 = scalar_lea.vmem [#allocation6], %s1788_s24  ;;  %s1048_s29 = sld [smem:[#allocation5 + $0x26]] }
  0x8e   :  { %v382_v7 = vld [vmem:[%s381_s28] sm:$0x1]  ;;  %s1605_s30 = sld [smem:[#allocation5 + $0x27]]  ;;  %s390_s1 = scalar_lea.vmem [#allocation6], %s1792_s20 }
  0x8f   :  { %s1607_s5 = sld [smem:[#allocation5 + $0x28]]  ;;  %v383_v8 = vadd.f32 %v382_v7, %v374_v6  ;;  %v391_v9 = vld [vmem:[%s390_s1] sm:$0x1] }
  0x90   :  { %s1609_s6 = sld [smem:[#allocation5 + $0x29]] }
  0x91   :  { %p395_p2 = scmp.gt.s32.totalorder %s1036_s26, 0  ;;  %p1037_p3 = scmp.lt.s32.totalorder %s1036_s26, 127  ;;  %v392_v10 = vadd.f32 %v391_v9, %v383_v8 }
  0x92   :  { %p404_p4 = scmp.gt.s32.totalorder %s1042_s27, 0  ;;  %p1043_p5 = scmp.lt.s32.totalorder %s1042_s27, 127 }
  0x93   :  { %s1794_s26 = smov (!%p395_p2, %s1036_s26), 0  ;;  %p413_p6 = scmp.gt.s32.totalorder %s1048_s29, 0 }
  0x94   :  { %s1796_s26 = smov (!%p1037_p3, %s1794_s26), 127  ;;  %s1798_s27 = smov (!%p404_p4, %s1042_s27), 0 }
  0x95   :  { %s399_s7 = scalar_lea.vmem [#allocation6], %s1796_s26  ;;  %s1800_s27 = smov (!%p1043_p5, %s1798_s27), 127 }
  0x96   :  { %v400_v11 = vld [vmem:[%s399_s7] sm:$0x1]  ;;  %s414_s8 = scalar_select %p413_p6, %s1048_s29, 0 }
  0x97   :  { %v401_v12 = vadd.f32 %v400_v11, %v392_v10  ;;  %p1049_p7 = scmp.lt.s32.totalorder %s1048_s29, 127  ;;  %s408_s2 = scalar_lea.vmem [#allocation6], %s1800_s27 }
  0x98   :  { %v409_v13 = vld [vmem:[%s408_s2] sm:$0x1]  ;;  %p422_p8 = scmp.gt.s32.totalorder %s1605_s30, 0  ;;  %p1055_p9 = scmp.lt.s32.totalorder %s1605_s30, 127 }
  0x99   :  { %v410_v14 = vadd.f32 %v409_v13, %v401_v12  ;;  %s1802_s8 = smov (!%p1049_p7, %s414_s8), 127  ;;  %p433_p10 = scmp.gt.s32.totalorder %s1607_s5, 0 }
  0x9a   :  { %s1804_s30 = smov (!%p422_p8, %s1605_s30), 0  ;;  %s417_s9 = scalar_lea.vmem [#allocation6], %s1802_s8 }
  0x9b   :  { %v418_v15 = vld [vmem:[%s417_s9] sm:$0x1]  ;;  %s1806_s30 = smov (!%p1055_p9, %s1804_s30), 127  ;;  %p1061_p11 = scmp.lt.s32.totalorder %s1607_s5, 127 }
  0x9c   :  { %v419_v16 = vadd.f32 %v418_v15, %v410_v14  ;;  %s434_s10 = scalar_select %p433_p10, %s1607_s5, 0 }
  0x9d   :  { %s426_s11 = scalar_lea.vmem [#allocation6], %s1806_s30  ;;  %p442_p12 = scmp.gt.s32.totalorder %s1609_s6, 0 }
  0x9e   :  { %v427_v17 = vld [vmem:[%s426_s11] sm:$0x1]  ;;  %p1067_p13 = scmp.lt.s32.totalorder %s1609_s6, 127  ;;  %s1808_s10 = smov (!%p1061_p11, %s434_s10), 127 }
  0x9f   :  { %v428_v18 = vadd.f32 %v427_v17, %v419_v16  ;;  %s1810_s6 = smov (!%p442_p12, %s1609_s6), 0  ;;  %s1072_s12 = sld [smem:[#allocation5 + $0x2a]] }
  0xa0   :  { %s1812_s6 = smov (!%p1067_p13, %s1810_s6), 127  ;;  %s1078_s13 = sld [smem:[#allocation5 + $0x2b]] }
  0xa1   :  { %429 = vst [vmem:[#allocation2 + $0x4] sm:$0x1] %v428_v18  ;;  %s1084_s14 = sld [smem:[#allocation5 + $0x2c]]  ;;  %s437_s17 = scalar_lea.vmem [#allocation6], %s1808_s10 }
  0xa2   :  { %s1620_s15 = sld [smem:[#allocation5 + $0x2d]]  ;;  %v438_v19 = vld [vmem:[%s437_s17] sm:$0x1]  ;;  %s446_s18 = scalar_lea.vmem [#allocation6], %s1812_s6 }
  0xa3   :  { %s1622_s16 = sld [smem:[#allocation5 + $0x2e]]  ;;  %v447_v20 = vld [vmem:[%s446_s18] sm:$0x1] }
  0xa4   :  { %s1624_s19 = sld [smem:[#allocation5 + $0x2f]]  ;;  %v448_v21 = vadd.f32 %v447_v20, %v438_v19 }
  0xa5   :  { %p451_p0 = scmp.gt.s32.totalorder %s1072_s12, 0  ;;  %p1073_p1 = scmp.lt.s32.totalorder %s1072_s12, 127 }
  0xa6   :  { %p460_p2 = scmp.gt.s32.totalorder %s1078_s13, 0  ;;  %p1079_p3 = scmp.lt.s32.totalorder %s1078_s13, 127 }
  0xa7   :  { %s1814_s12 = smov (!%p451_p0, %s1072_s12), 0  ;;  %p469_p4 = scmp.gt.s32.totalorder %s1084_s14, 0 }
  0xa8   :  { %s1816_s12 = smov (!%p1073_p1, %s1814_s12), 127  ;;  %s1818_s13 = smov (!%p460_p2, %s1078_s13), 0 }
  0xa9   :  { %s455_s20 = scalar_lea.vmem [#allocation6], %s1816_s12  ;;  %s1820_s13 = smov (!%p1079_p3, %s1818_s13), 127 }
  0xaa   :  { %v456_v22 = vld [vmem:[%s455_s20] sm:$0x1]  ;;  %s470_s21 = scalar_select %p469_p4, %s1084_s14, 0 }
  0xab   :  { %v457_v23 = vadd.f32 %v456_v22, %v448_v21  ;;  %p1085_p5 = scmp.lt.s32.totalorder %s1084_s14, 127  ;;  %s464_s22 = scalar_lea.vmem [#allocation6], %s1820_s13 }
  0xac   :  { %v465_v24 = vld [vmem:[%s464_s22] sm:$0x1]  ;;  %p478_p6 = scmp.gt.s32.totalorder %s1620_s15, 0  ;;  %p1091_p7 = scmp.lt.s32.totalorder %s1620_s15, 127 }
  0xad   :  { %v466_v25 = vadd.f32 %v465_v24, %v457_v23  ;;  %s1822_s21 = smov (!%p1085_p5, %s470_s21), 127  ;;  %p487_p8 = scmp.gt.s32.totalorder %s1622_s16, 0 }
  0xae   :  { %s1824_s15 = smov (!%p478_p6, %s1620_s15), 0  ;;  %s473_s23 = scalar_lea.vmem [#allocation6], %s1822_s21 }
  0xaf   :  { %v474_v26 = vld [vmem:[%s473_s23] sm:$0x1]  ;;  %s1826_s15 = smov (!%p1091_p7, %s1824_s15), 127  ;;  %p1097_p9 = scmp.lt.s32.totalorder %s1622_s16, 127 }
  0xb0   :  { %v475_v27 = vadd.f32 %v474_v26, %v466_v25  ;;  %s488_s24 = scalar_select %p487_p8, %s1622_s16, 0 }
  0xb1   :  { %s482_s25 = scalar_lea.vmem [#allocation6], %s1826_s15  ;;  %p496_p10 = scmp.gt.s32.totalorder %s1624_s19, 0 }
  0xb2   :  { %v483_v28 = vld [vmem:[%s482_s25] sm:$0x1]  ;;  %p1103_p11 = scmp.lt.s32.totalorder %s1624_s19, 127  ;;  %s1828_s24 = smov (!%p1097_p9, %s488_s24), 127 }
  0xb3   :  { %v484_v29 = vadd.f32 %v483_v28, %v475_v27  ;;  %s1830_s19 = smov (!%p496_p10, %s1624_s19), 0  ;;  %s1108_s0 = sld [smem:[#allocation5 + $0x30]] }
  0xb4   :  { %s491_s26 = scalar_lea.vmem [#allocation6], %s1828_s24  ;;  %s1832_s19 = smov (!%p1103_p11, %s1830_s19), 127 }
  0xb5   :  { %v492_v30 = vld [vmem:[%s491_s26] sm:$0x1]  ;;  %s1114_s27 = sld [smem:[#allocation5 + $0x31]]  ;;  %s500_s29 = scalar_lea.vmem [#allocation6], %s1832_s19 }
  0xb6   :  { %v493_v31 = vadd.f32 %v492_v30, %v484_v29  ;;  %s1120_s28 = sld [smem:[#allocation5 + $0x32]]  ;;  %v501_v32 = vld [vmem:[%s500_s29] sm:$0x1] }
  0xb7   :  { %s1126_s30 = sld [smem:[#allocation5 + $0x33]] }
  0xb8   :  { %v502_v33 = vadd.f32 %v501_v32, %v493_v31  ;;  %s1635_s5 = sld [smem:[#allocation5 + $0x34]] }
  0xb9   :  { %p507_p12 = scmp.gt.s32.totalorder %s1108_s0, 0  ;;  %p1109_p13 = scmp.lt.s32.totalorder %s1108_s0, 127 }
  0xba   :  { %503 = vst [vmem:[#allocation2 + $0x5] sm:$0x1] %v502_v33  ;;  %s1637_s1 = sld [smem:[#allocation5 + $0x35]] }
  0xbb   :  { %s1834_s0 = smov (!%p507_p12, %s1108_s0), 0  ;;  %p516_p0 = scmp.gt.s32.totalorder %s1114_s27, 0 }
  0xbc   :  { %p1115_p1 = scmp.lt.s32.totalorder %s1114_s27, 127  ;;  %s1836_s0 = smov (!%p1109_p13, %s1834_s0), 127 }
  0xbd   :  { %s1838_s27 = smov (!%p516_p0, %s1114_s27), 0  ;;  %p525_p2 = scmp.gt.s32.totalorder %s1120_s28, 0 }
  0xbe   :  { %s1840_s27 = smov (!%p1115_p1, %s1838_s27), 127  ;;  %p1121_p3 = scmp.lt.s32.totalorder %s1120_s28, 127 }
  0xbf   :  { %s526_s6 = scalar_select %p525_p2, %s1120_s28, 0 }
  0xc0   :  { %p534_p4 = scmp.gt.s32.totalorder %s1126_s30, 0  ;;  %p1127_p5 = scmp.lt.s32.totalorder %s1126_s30, 127 }
  0xc1   :  { %s511_s7 = scalar_lea.vmem [#allocation6], %s1836_s0  ;;  %s520_s8 = scalar_lea.vmem [#allocation6], %s1840_s27 }
  0xc2   :  { %v512_v34 = vld [vmem:[%s511_s7] sm:$0x1]  ;;  %s1842_s6 = smov (!%p1121_p3, %s526_s6), 127  ;;  %s1844_s30 = smov (!%p534_p4, %s1126_s30), 0 }
  0xc3   :  { %v521_v35 = vld [vmem:[%s520_s8] sm:$0x1]  ;;  %p543_p6 = scmp.gt.s32.totalorder %s1635_s5, 0  ;;  %s1846_s30 = smov (!%p1127_p5, %s1844_s30), 127 }
  0xc4   :  { %v522_v36 = vadd.f32 %v521_v35, %v512_v34  ;;  %s529_s2 = scalar_lea.vmem [#allocation6], %s1842_s6  ;;  %p1133_p7 = scmp.lt.s32.totalorder %s1635_s5, 127 }
  0xc5   :  { %v530_v37 = vld [vmem:[%s529_s2] sm:$0x1]  ;;  %s544_s9 = scalar_select %p543_p6, %s1635_s5, 0 }
  0xc6   :  { %p552_p8 = scmp.gt.s32.totalorder %s1637_s1, 0  ;;  %p1139_p9 = scmp.lt.s32.totalorder %s1637_s1, 127  ;;  %v531_v38 = vadd.f32 %v530_v37, %v522_v36 }
  0xc7   :  { %s1848_s9 = smov (!%p1133_p7, %s544_s9), 127  ;;  %s538_s10 = scalar_lea.vmem [#allocation6], %s1846_s30 }
  0xc8   :  { %v539_v39 = vld [vmem:[%s538_s10] sm:$0x1]  ;;  %s1850_s1 = smov (!%p552_p8, %s1637_s1), 0  ;;  %s1144_s11 = sld [smem:[#allocation5 + $0x36]] }
  0xc9   :  { %s1852_s1 = smov (!%p1139_p9, %s1850_s1), 127  ;;  %v540_v40 = vadd.f32 %v539_v39, %v531_v38  ;;  %s1150_s12 = sld [smem:[#allocation5 + $0x37]] }
  0xca   :  { %s547_s13 = scalar_lea.vmem [#allocation6], %s1848_s9  ;;  %s1156_s14 = sld [smem:[#allocation5 + $0x38]] }
  0xcb   :  { %v548_v41 = vld [vmem:[%s547_s13] sm:$0x1]  ;;  %s1645_s15 = sld [smem:[#allocation5 + $0x39]]  ;;  %s556_s17 = scalar_lea.vmem [#allocation6], %s1852_s1 }
  0xcc   :  { %s1647_s16 = sld [smem:[#allocation5 + $0x3a]]  ;;  %v549_v42 = vadd.f32 %v548_v41, %v540_v40  ;;  %v557_v43 = vld [vmem:[%s556_s17] sm:$0x1]  ;;  %s1480_s9 = smov [#allocation11]  }
  0xcd   :  { %s1649_s18 = sld [smem:[#allocation5 + $0x3b]]  ;;  %s744_s10 = sshll.u32 %s1480_s9, 4  ;;  %s745_s10 = int_to_ptr.vmem [resolvable:$true] %s744_s10 }
  0xce   :  { %p561_p10 = scmp.gt.s32.totalorder %s1144_s11, 0  ;;  %p1145_p11 = scmp.lt.s32.totalorder %s1144_s11, 127  ;;  %v558_v44 = vadd.f32 %v557_v43, %v549_v42 }
  0xcf   :  { %p570_p12 = scmp.gt.s32.totalorder %s1150_s12, 0  ;;  %p1151_p13 = scmp.lt.s32.totalorder %s1150_s12, 127 }
  0xd0   :  { %s1854_s11 = smov (!%p561_p10, %s1144_s11), 0  ;;  %p581_p0 = scmp.gt.s32.totalorder %s1156_s14, 0 }
  0xd1   :  { %s1856_s11 = smov (!%p1145_p11, %s1854_s11), 127  ;;  %s1858_s12 = smov (!%p570_p12, %s1150_s12), 0 }
  0xd2   :  { %s565_s19 = scalar_lea.vmem [#allocation6], %s1856_s11  ;;  %s1860_s12 = smov (!%p1151_p13, %s1858_s12), 127 }
  0xd3   :  { %v566_v45 = vld [vmem:[%s565_s19] sm:$0x1]  ;;  %s582_s20 = scalar_select %p581_p0, %s1156_s14, 0 }
  0xd4   :  { %v567_v46 = vadd.f32 %v566_v45, %v558_v44  ;;  %p1157_p1 = scmp.lt.s32.totalorder %s1156_s14, 127  ;;  %s574_s21 = scalar_lea.vmem [#allocation6], %s1860_s12 }
  0xd5   :  { %v575_v47 = vld [vmem:[%s574_s21] sm:$0x1]  ;;  %p590_p2 = scmp.gt.s32.totalorder %s1645_s15, 0  ;;  %p1163_p3 = scmp.lt.s32.totalorder %s1645_s15, 127 }
  0xd6   :  { %v576_v48 = vadd.f32 %v575_v47, %v567_v46  ;;  %s1862_s20 = smov (!%p1157_p1, %s582_s20), 127  ;;  %p599_p4 = scmp.gt.s32.totalorder %s1647_s16, 0 }
  0xd7   :  { %s1864_s15 = smov (!%p590_p2, %s1645_s15), 0  ;;  %p1169_p5 = scmp.lt.s32.totalorder %s1647_s16, 127 }
  0xd8   :  { %577 = vst [vmem:[#allocation2 + $0x6] sm:$0x1] %v576_v48  ;;  %s1866_s15 = smov (!%p1163_p3, %s1864_s15), 127  ;;  %p608_p6 = scmp.gt.s32.totalorder %s1649_s18, 0 }
  0xd9   :  { %s600_s22 = scalar_select %p599_p4, %s1647_s16, 0 }
  0xda   :  { %p1175_p7 = scmp.lt.s32.totalorder %s1649_s18, 127  ;;  %s585_s23 = scalar_lea.vmem [#allocation6], %s1862_s20 }
  0xdb   :  { %s1868_s22 = smov (!%p1169_p5, %s600_s22), 127  ;;  %v586_v49 = vld [vmem:[%s585_s23] sm:$0x1]  ;;  %s594_s24 = scalar_lea.vmem [#allocation6], %s1866_s15 }
  0xdc   :  { %v595_v50 = vld [vmem:[%s594_s24] sm:$0x1]  ;;  %s1870_s18 = smov (!%p608_p6, %s1649_s18), 0  ;;  %s1180_s25 = sld [smem:[#allocation5 + $0x3c]] }
  0xdd   :  { %s1872_s18 = smov (!%p1175_p7, %s1870_s18), 127  ;;  %v596_v51 = vadd.f32 %v595_v50, %v586_v49  ;;  %s1186_s0 = sld [smem:[#allocation5 + $0x3d]] }
  0xde   :  { %s603_s26 = scalar_lea.vmem [#allocation6], %s1868_s22  ;;  %s1192_s27 = sld [smem:[#allocation5 + $0x3e]] }
  0xdf   :  { %v604_v52 = vld [vmem:[%s603_s26] sm:$0x1]  ;;  %s612_s28 = scalar_lea.vmem [#allocation6], %s1872_s18  ;;  %s1198_s29 = sld [smem:[#allocation5 + $0x3f]] }
  0xe0   :  { %v605_v53 = vadd.f32 %v604_v52, %v596_v51  ;;  %v613_v54 = vld [vmem:[%s612_s28] sm:$0x1]  ;;  %s746_s13 = sshll.u32 %s1670_s4, 4  ;;  %s747_s13 = int_to_ptr.hbm [resolvable:$true] %s746_s13 }
  0xe2   :  { %p617_p8 = scmp.gt.s32.totalorder %s1180_s25, 0  ;;  %p1181_p9 = scmp.lt.s32.totalorder %s1180_s25, 127  ;;  %v614_v55 = vadd.f32 %v613_v54, %v605_v53 }
  0xe3   :  { %p626_p10 = scmp.gt.s32.totalorder %s1186_s0, 0  ;;  %p1187_p11 = scmp.lt.s32.totalorder %s1186_s0, 127 }
  0xe4   :  { %s1874_s25 = smov (!%p617_p8, %s1180_s25), 0  ;;  %p635_p12 = scmp.gt.s32.totalorder %s1192_s27, 0 }
  0xe5   :  { %s1876_s25 = smov (!%p1181_p9, %s1874_s25), 127  ;;  %s1878_s0 = smov (!%p626_p10, %s1186_s0), 0 }
  0xe6   :  { %s621_s30 = scalar_lea.vmem [#allocation6], %s1876_s25  ;;  %s1880_s0 = smov (!%p1187_p11, %s1878_s0), 127 }
  0xe7   :  { %v622_v56 = vld [vmem:[%s621_s30] sm:$0x1]  ;;  %s636_s5 = scalar_select %p635_p12, %s1192_s27, 0 }
  0xe8   :  { %v623_v57 = vadd.f32 %v622_v56, %v614_v55  ;;  %p1193_p13 = scmp.lt.s32.totalorder %s1192_s27, 127  ;;  %s630_s1 = scalar_lea.vmem [#allocation6], %s1880_s0 }
  0xe9   :  { %v631_v58 = vld [vmem:[%s630_s1] sm:$0x1]  ;;  %p644_p0 = scmp.gt.s32.totalorder %s1198_s29, 0  ;;  %p1199_p1 = scmp.lt.s32.totalorder %s1198_s29, 127 }
  0xea   :  { %v632_v59 = vadd.f32 %v631_v58, %v623_v57  ;;  %s1882_s5 = smov (!%p1193_p13, %s636_s5), 127 }
  0xeb   :  { %s1884_s29 = smov (!%p644_p0, %s1198_s29), 0  ;;  %s639_s6 = scalar_lea.vmem [#allocation6], %s1882_s5 }
  0xec   :  { %v640_v60 = vld [vmem:[%s639_s6] sm:$0x1]  ;;  %s1886_s29 = smov (!%p1199_p1, %s1884_s29), 127 }
  0xed   :  { %v641_v61 = vadd.f32 %v640_v60, %v632_v59  ;;  %s648_s7 = scalar_lea.vmem [#allocation6], %s1886_s29 }
  0xee   :  { %v649_v62 = vld [vmem:[%s648_s7] sm:$0x1] }
  0xef   :  { %v650_v63 = vadd.f32 %v649_v62, %v641_v61 }
  0xf1   :  { %651 = vst [vmem:[#allocation2 + $0x7] sm:$0x1] %v650_v63 }
  0xf8   :  { %v652_v0 = vld [vmem:[#allocation2] sm:$0xff] }
  0xf9   :  { %v653_v1 = vmul.f32 0.125, %v652_v0 }
  0xfb   :  { %v654_v2 = vpack.c.bf16 %v653_v1, %v653_v1 }
  0xfd   :  { %655 = vst [vmem:[#allocation3] sm:$0xf] %v654_v2 }
 0x104   :  { %v656_v3 = vld [vmem:[#allocation3] sm:$0xf] }
 0x105   :  { %733 = vmatmul.bf16.vlgmr.msra.gmra.mxu0 %v656_v3 }
 0x182   :  { %v734_v5 = vpop.f32.mrf.mxu0 }
 0x183   :  { %v735_v6 = vadd.f32 %v1380_v4, %v734_v5 }
 0x185   :  { %738 = vst [vmem:[#allocation11] sm:$0xff] %v735_v6 }
 0x186   :  { %749 = dma.vmem_to_hbm [thread:$0]  %s745_s10, 128, %s747_s13, [#allocation8]  }
 0x18a   :  { %v736_v7 = vpop.f32.mrf.mxu0 }
 0x18b   :  { %1471 = dma.done.wait [#allocation8], 128  }
 0x18c   :  { %1472 = vsyncadd [#allocation8], 4294967168 }
 0x18d   :  { %754 = vsyncpa [#allocation7], 1 }
 0x18e   :  { %755 = vsyncpa [#allocation10], 1 }
 0x18f   :  { %756 = vsyncpa [#allocation8], 1 }

</bundles_post_ra>
